<compile_context>
chip_gen: v5e
topology: v5e:2x2
jax: 0.10.0
libtpu: 0.0.40
codegen_flags: <defaults>
</compile_context>

<pallas_src>
import functools
import numpy as np
import jax
import jax.numpy as jnp
from jax.experimental import pallas as pl
from jax.experimental.pallas import tpu as pltpu


# ---------------------------------------------------------------------------
# Weight construction — exact port of NNLayer0_lstsq.__init__ (numpy glue).
# ---------------------------------------------------------------------------
def build_weights(size_in, n_activations, number_binary_operations):
    w1 = np.tile(np.eye(size_in), (n_activations, 1))
    if number_binary_operations > 0:
        w2 = np.zeros((0, size_in))
        for n1 in range(size_in - 1, 0, -1):
            left = np.concatenate(
                [np.zeros((n1, size_in - 1 - n1)), np.ones((n1, 1))], axis=1)
            left_aug = np.concatenate([left, np.zeros_like(left)], axis=1)
            left = left_aug.reshape(-1, size_in - n1)
            right = np.eye(n1)
            right_aug = np.concatenate([np.zeros_like(right), right], axis=1)
            right = right_aug.reshape(-1, n1)
            join = np.concatenate([left, right], axis=1)
            w2 = np.concatenate([w2, join], axis=0)
        return np.concatenate([w1, w2], axis=0).astype(np.float32)
    return w1.astype(np.float32)


def build_fused_weights(weights, num_unary, num_binary):
    """Reorder module weights (num_unary + 2*num_binary, size_in) into
    [unary rows | binary-left operand rows | binary-right operand rows] so the
    kernel needs a single fused matmul.  Done once in numpy (constants)."""
    w = np.asarray(weights, np.float32)
    if num_binary > 0:
        w2 = w[num_unary:]
        return np.concatenate([w[:num_unary], w2[0::2], w2[1::2]], axis=0)
    return w[:num_unary]


def _option_fn(option):
    return {
        2: jax.nn.relu,
        3: jax.nn.sigmoid,
        4: jnp.tanh,
        5: jax.nn.elu,
        6: jax.nn.silu,
    }.get(option, lambda z: z)


# ---------------------------------------------------------------------------
# Pallas kernel.
#   x_ref  : (tb, size_in)            batch on sublanes, raw (B, size_in) tile
#   w_ref  : (num_unary + 2*num_binary, size_in)  resident across the grid
#   out_ref: (out_cols, tb)           batch on lanes -> lane-dense store
# ---------------------------------------------------------------------------
def _nnlayer0_kernel(x_ref, w_ref, out_ref, *, size_in, acts, num_unary,
                     num_binary, option):
    # W @ x^T done entirely on-chip (contract dim 1 of both operands); the
    # operand transpose stays in VMEM instead of being a separate HBM pass.
    lin = jax.lax.dot_general(
        w_ref[...], x_ref[...],
        dimension_numbers=(((1,), (1,)), ((), ())),
        preferred_element_type=jnp.float32)            # (w_rows, tb)

    tb = lin.shape[1]
    n_act = num_unary // size_in

    # Unary part: activation b owns rows [b*size_in, (b+1)*size_in).
    # Compute every activation over the whole unary block and select by row
    # index — a bit of redundant (free) EUP/VPU work instead of sublane-
    # straddling 4-row slices + relayout.
    u = lin[:num_unary, :]
    out_u = acts[0](u)
    if n_act > 1:
        row = jax.lax.broadcasted_iota(jnp.int32, (num_unary, tb), 0)
        for b in range(1, n_act):
            out_u = jnp.where(row >= b * size_in, acts[b](u), out_u)

    # Binary part: elementwise product of the left/right operand row blocks.
    if num_binary > 0:
        left = lin[num_unary:num_unary + num_binary, :]
        right = lin[num_unary + num_binary:num_unary + 2 * num_binary, :]
        out_b = _option_fn(option)(left * right)
        out_val = jnp.concatenate([out_u, out_b], axis=0)
    else:
        out_val = out_u

    out_ref[...] = out_val.astype(out_ref.dtype)       # single dense store


def make_nnlayer0_forward(size_in, activation_funct, num_unary, num_binary,
                          option, *, block_b=16384, out_dtype=jnp.float32,
                          transpose_output=True):
    """Builds a jitted forward(x, fused_weights) for NNLayer0_lstsq.

    x: (B, size_in) float; fused_weights: (num_unary + 2*num_binary, size_in)
    from build_fused_weights.  Returns (B, num_unary + num_binary) (PyTorch
    order) by default, or the kernel-native (num_unary + num_binary, B) layout
    when transpose_output=False (lets a downstream matmul consume it directly
    and skips one HBM pass)."""
    n_act = num_unary // size_in
    assert num_unary % size_in == 0 and n_act <= len(activation_funct)
    acts = tuple(activation_funct)
    out_cols = num_unary + num_binary
    w_rows = num_unary + 2 * num_binary if num_binary > 0 else num_unary

    kernel = functools.partial(
        _nnlayer0_kernel, size_in=size_in, acts=acts,
        num_unary=num_unary, num_binary=num_binary, option=option)

    @jax.jit
    def forward(x, fused_weights):
        batch = x.shape[0]
        x = x.astype(jnp.float32)
        fused_weights = fused_weights.astype(jnp.float32)

        # Batch tile: lane-aligned (multiple of 128), capped by the batch size
        # rounded up.  No padding of x — ragged last block is masked by Pallas.
        bb = max(128, (block_b // 128) * 128)
        tb = min(bb, ((batch + 127) // 128) * 128)
        grid = pl.cdiv(batch, tb)

        out_t = pl.pallas_call(
            kernel,
            out_shape=jax.ShapeDtypeStruct((out_cols, batch), out_dtype),
            grid=(grid,),
            in_specs=[
                pl.BlockSpec((tb, size_in), lambda i: (i, 0)),      # x tile
                pl.BlockSpec((w_rows, size_in), lambda i: (0, 0)),  # resident W
            ],
            out_specs=pl.BlockSpec((out_cols, tb), lambda i: (0, i)),
            compiler_params=pltpu.CompilerParams(
                dimension_semantics=("parallel",),        # megacore-shardable
                vmem_limit_bytes=40 * 1024 * 1024),
        )(x, fused_weights)

        if transpose_output:
            return out_t.T            # fused under this jit; PyTorch layout
        return out_t

    return forward


# ---------------------------------------------------------------------------
# Pure-JAX reference (mirrors the PyTorch forward) for a sanity check.
# ---------------------------------------------------------------------------
def reference_forward(x, weights, size_in, acts, num_unary, num_binary, option):
    lin = x.astype(jnp.float32) @ jnp.asarray(weights, jnp.float32).T
    cols = []
    for i in range(num_unary):
        act = acts[i // size_in]
        cols.append(act(lin[:, i])[:, None])
    if num_binary > 0:
        fn = _option_fn(option)
        for i in range(num_unary, num_unary + 2 * num_binary, 2):
            cols.append(fn(lin[:, i] * lin[:, i + 1])[:, None])
    return jnp.concatenate(cols, axis=1)


if __name__ == "__main__":
    # Deterministic synthetic config (mirrors the module's __init__ shapes).
    size_in = 4
    activationFunct = [lambda z: z, jnp.sin, jnp.cos]        # 3 unary activations
    number_unary_operations = len(activationFunct) * size_in            # 12
    number_binary_operations = size_in * (size_in - 1) // 2             # 6
    option = 4                                                          # tanh(a*b)
    batch = 300                                          # exercises ragged masking

    weights = build_weights(size_in, len(activationFunct), number_binary_operations)
    fused = jnp.asarray(build_fused_weights(
        weights, number_unary_operations, number_binary_operations))

    key = jax.random.PRNGKey(0)
    x = jax.random.normal(key, (batch, size_in), dtype=jnp.float32)

    fwd = make_nnlayer0_forward(size_in, activationFunct, number_unary_operations,
                                number_binary_operations, option)
    out = jax.block_until_ready(fwd(x, fused))

    ref = reference_forward(x, jnp.asarray(weights), size_in, activationFunct,
                            number_unary_operations, number_binary_operations,
                            option)
    assert out.shape == (batch, number_unary_operations + number_binary_operations)
    np.testing.assert_allclose(np.asarray(out), np.asarray(ref), rtol=1e-5, atol=1e-5)

    # Multi-step batch grid with a ragged last block (300 = 2*128 + 44).
    fwd_small = make_nnlayer0_forward(size_in, activationFunct,
                                      number_unary_operations,
                                      number_binary_operations, option,
                                      block_b=128)
    out2 = jax.block_until_ready(fwd_small(x, fused))
    np.testing.assert_allclose(np.asarray(out2), np.asarray(ref), rtol=1e-5, atol=1e-5)

    # num_binary == 0 specialization (single weight operand, no binary branch).
    w0 = build_weights(size_in, len(activationFunct), 0)
    fused0 = jnp.asarray(build_fused_weights(w0, number_unary_operations, 0))
    fwd0 = make_nnlayer0_forward(size_in, activationFunct,
                                 number_unary_operations, 0, option)
    out0 = jax.block_until_ready(fwd0(x, fused0))
    ref0 = reference_forward(x, jnp.asarray(w0), size_in, activationFunct,
                             number_unary_operations, 0, option)
    np.testing.assert_allclose(np.asarray(out0), np.asarray(ref0), rtol=1e-5, atol=1e-5)

    print("KERNEL_OK")
</pallas_src>

<mosaic_0001>
module attributes {stable_mosaic.version = 11 : i64} {
  func.func @_nnlayer0_kernel(%arg0: i32, %arg1: memref<384x4xf32, #tpu.memory_space<vmem>>, %arg2: memref<24x4xf32, #tpu.memory_space<vmem>>, %arg3: memref<18x384xf32, #tpu.memory_space<vmem>>) attributes {dimension_semantics = [#tpu.dimension_semantics<parallel>], iteration_bounds = array<i64: 1>, scalar_prefetch = 0 : i64, scratch_operands = 0 : i64, tpu.core_type = #tpu.core_type<tc>, window_params = [{transform_indices = @transform_0, window_bounds = array<i64: 384, 4>}, {pipeline_mode = #tpu.pipeline_mode<synchronous>, transform_indices = @transform_1, window_bounds = array<i64: 24, 4>}, {transform_indices = @transform_2, window_bounds = array<i64: 18, 384>}]} {
    %c0 = arith.constant 0 : index
    %c0_0 = arith.constant 0 : index
    %0 = vector.load %arg2[%c0, %c0_0] : memref<24x4xf32, #tpu.memory_space<vmem>>, vector<24x4xf32>
    %c0_1 = arith.constant 0 : index
    %c0_2 = arith.constant 0 : index
    %1 = vector.load %arg1[%c0_1, %c0_2] : memref<384x4xf32, #tpu.memory_space<vmem>>, vector<384x4xf32>
    %cst = arith.constant dense<0.000000e+00> : vector<24x384xf32>
    %2 = tpu.matmul %0, %1, %cst {dimension_numbers = #tpu.dot_dimension_numbers<[1], [1], [0], [0], [0, 0, 1, 0], [], []>} : vector<24x4xf32>, vector<384x4xf32>, vector<24x384xf32> -> vector<24x384xf32>
    %3 = vector.extract_strided_slice %2 {offsets = [0, 0], sizes = [12, 384], strides = [1, 1]} : vector<24x384xf32> to vector<12x384xf32>
    %4 = tpu.iota {dimensions = array<i32: 0>} : vector<12x384xi32>
    %c4_i32 = arith.constant 4 : i32
    %5 = vector.broadcast %c4_i32 : i32 to vector<12x384xi32>
    %6 = arith.cmpi sge, %4, %5 : vector<12x384xi32>
    %7 = math.sin %3 : vector<12x384xf32>
    %8 = arith.select %6, %7, %3 : vector<12x384xi1>, vector<12x384xf32>
    %c8_i32 = arith.constant 8 : i32
    %9 = vector.broadcast %c8_i32 : i32 to vector<12x384xi32>
    %10 = arith.cmpi sge, %4, %9 : vector<12x384xi32>
    %11 = math.cos %3 : vector<12x384xf32>
    %12 = arith.select %10, %11, %8 : vector<12x384xi1>, vector<12x384xf32>
    %13 = vector.extract_strided_slice %2 {offsets = [12, 0], sizes = [6, 384], strides = [1, 1]} : vector<24x384xf32> to vector<6x384xf32>
    %14 = vector.extract_strided_slice %2 {offsets = [18, 0], sizes = [6, 384], strides = [1, 1]} : vector<24x384xf32> to vector<6x384xf32>
    %15 = arith.mulf %13, %14 : vector<6x384xf32>
    %16 = math.tanh %15 : vector<6x384xf32>
    %17 = tpu.concatenate %12, %16 in 0 : vector<12x384xf32>, vector<6x384xf32> -> vector<18x384xf32>
    %c0_3 = arith.constant 0 : index
    %c0_4 = arith.constant 0 : index
    %18 = vector.load %arg3[%c0_3, %c0_4] : memref<18x384xf32, #tpu.memory_space<vmem>>, vector<18x384xf32>
    tpu.vector_store %arg3[%c0_3, %c0_4], %17 {strides = array<i32>} : memref<18x384xf32, #tpu.memory_space<vmem>>, vector<18x384xf32>,
    return
  }
  func.func @transform_0(%arg0: i32) -> (i32, i32) {
    %c0_i32 = arith.constant 0 : i32
    %c0_i32_0 = arith.constant 0 : i32
    return %arg0, %c0_i32 : i32, i32
  }
  func.func @transform_1(%arg0: i32) -> (i32, i32) {
    %c0_i32 = arith.constant 0 : i32
    %c0_i32_0 = arith.constant 0 : i32
    %c0_i32_1 = arith.constant 0 : i32
    return %c0_i32, %c0_i32_0 : i32, i32
  }
  func.func @transform_2(%arg0: i32) -> (i32, i32) {
    %c0_i32 = arith.constant 0 : i32
    %c0_i32_0 = arith.constant 0 : i32
    return %c0_i32, %arg0 : i32, i32
  }
}

</mosaic_0001>

<bundles_post_ra>
// kernel: forward.1
= control target key start
LH: loop header
LB: loop body
LE: loop exit
PB: predicated region body
PF: predicated region fallthrough
CT: control target
= control target key end

     0   :  { %vm63_vm0 = vcmask 31744   ;;  %s3327_s0 = inlined_call_operand.vmem [shape: f32[300,4], index: 0, kind: input, shape index: {}]   ;;  %s3328_s1 = inlined_call_operand.vmem [shape: f32[24,4], index: 1, kind: input, shape index: {}]   ;;  %s3329_s2 = inlined_call_operand.hbm [shape: f32[18,300], index: 2, kind: output, shape index: {}]  }
   0x1   :  { %v30_v0 = vld [vmem:[%s3327_s0 + $0x78] sm:$0xff]  ;;  %v29_v3 = vld [vmem:[%s3327_s0 + $0x70] sm:$0xff]  ;;  %v28_v6 = vld [vmem:[%s3327_s0 + $0x68] sm:$0xff] }
   0x2   :  { %v46_v1 = vld [vmem:[%s3327_s0 + $0xf8] sm:$0xff]  ;;  %2220 = vmatpush.xpose.msk.msra.mxu0 %vm63_vm0, %v30_v0  ;;  %2313 = vmatpush.xpose.msk.msra.mxu3 %vm63_vm0, %v30_v0  ;;  %v45_v4 = vld [vmem:[%s3327_s0 + $0xf0] sm:$0xff]  ;;  %v44_v7 = vld [vmem:[%s3327_s0 + $0xe8] sm:$0xff] }
   0x3   :  { %v62_v2 = vld [vmem:[%s3327_s0 + $0x178] sm:$0xff]  ;;  %2239 = vmatpush.xpose.msk.msra.mxu1 %vm63_vm0, %v46_v1  ;;  %v61_v5 = vld [vmem:[%s3327_s0 + $0x170] sm:$0xff]  ;;  %v60_v8 = vld [vmem:[%s3327_s0 + $0x168] sm:$0xff] }
   0x4   :  { %2258 = vmatpush.xpose.msk.msra.mxu2 %vm63_vm0, %v62_v2  ;;  %v27_v9 = vld [vmem:[%s3327_s0 + $0x60] sm:$0xff] }
   0x5   :  { %v43_v10 = vld [vmem:[%s3327_s0 + $0xe0] sm:$0xff] }
   0x6   :  { %2221 = vmatpush.xpose.msk.msra.mxu0 %vm63_vm0, %v29_v3  ;;  %2314 = vmatpush.xpose.msk.msra.mxu3 %vm63_vm0, %v29_v3  ;;  %v59_v11 = vld [vmem:[%s3327_s0 + $0x160] sm:$0xff] }
   0x7   :  { %2240 = vmatpush.xpose.msk.msra.mxu1 %vm63_vm0, %v45_v4 }
   0x8   :  { %2259 = vmatpush.xpose.msk.msra.mxu2 %vm63_vm0, %v61_v5 }
   0xa   :  { %2222 = vmatpush.xpose.msk.msra.mxu0 %vm63_vm0, %v28_v6  ;;  %2315 = vmatpush.xpose.msk.msra.mxu3 %vm63_vm0, %v28_v6 }
   0xb   :  { %2241 = vmatpush.xpose.msk.msra.mxu1 %vm63_vm0, %v44_v7 }
   0xc   :  { %2260 = vmatpush.xpose.msk.msra.mxu2 %vm63_vm0, %v60_v8 }
   0xd   :  { %7 = vsyncpa [#allocation3], 0  ;;  %v26_v12 = vld [vmem:[%s3327_s0 + $0x58] sm:$0xff]  ;;  %v25_v15 = vld [vmem:[%s3327_s0 + $0x50] sm:$0xff]  ;;  %s2208_s29 = sshll.u32 %s3329_s2, 4  ;;  %s2385_s30 = smov 384   ;;  %s2209_s29 = int_to_ptr.hbm [resolvable:$true] %s2208_s29 }
   0xe   :  { %2223 = vmatpush.xpose.msk.msra.mxu0 %vm63_vm0, %v27_v9  ;;  %2316 = vmatpush.xpose.msk.msra.mxu3 %vm63_vm0, %v27_v9  ;;  %v42_v13 = vld [vmem:[%s3327_s0 + $0xd8] sm:$0xff]  ;;  %v41_v16 = vld [vmem:[%s3327_s0 + $0xd0] sm:$0xff]  ;;  %v24_v18 = vld [vmem:[%s3327_s0 + $0x48] sm:$0xff]  ;;  %s2386_s3 = smov 24  }
   0xf   :  { %2242 = vmatpush.xpose.msk.msra.mxu1 %vm63_vm0, %v43_v10  ;;  %v58_v14 = vld [vmem:[%s3327_s0 + $0x158] sm:$0xff]  ;;  %v57_v17 = vld [vmem:[%s3327_s0 + $0x150] sm:$0xff]  ;;  %v40_v19 = vld [vmem:[%s3327_s0 + $0xc8] sm:$0xff] }
  0x10   :  { %2261 = vmatpush.xpose.msk.msra.mxu2 %vm63_vm0, %v59_v11  ;;  %v56_v20 = vld [vmem:[%s3327_s0 + $0x148] sm:$0xff]  ;;  %v23_v21 = vld [vmem:[%s3327_s0 + $0x40] sm:$0xff]  ;;  %v22_v24 = vld [vmem:[%s3327_s0 + $0x38] sm:$0xff]  ;;  %v2377_v11 = vmov 683565275  }
  0x11   :  { %v39_v22 = vld [vmem:[%s3327_s0 + $0xc0] sm:$0xff]  ;;  %v38_v25 = vld [vmem:[%s3327_s0 + $0xb8] sm:$0xff]  ;;  %v21_v27 = vld [vmem:[%s3327_s0 + $0x30] sm:$0xff] }
  0x12   :  { %2224 = vmatpush.xpose.msk.msra.mxu0 %vm63_vm0, %v26_v12  ;;  %2317 = vmatpush.xpose.msk.msra.mxu3 %vm63_vm0, %v26_v12  ;;  %v55_v23 = vld [vmem:[%s3327_s0 + $0x140] sm:$0xff]  ;;  %v54_v26 = vld [vmem:[%s3327_s0 + $0x138] sm:$0xff]  ;;  %v37_v28 = vld [vmem:[%s3327_s0 + $0xb0] sm:$0xff] }
  0x13   :  { %2243 = vmatpush.xpose.msk.msra.mxu1 %vm63_vm0, %v42_v13  ;;  %v53_v29 = vld [vmem:[%s3327_s0 + $0x130] sm:$0xff]  ;;  %v20_v30 = vld [vmem:[%s3327_s0 + $0x28] sm:$0xff]  ;;  %v19_v33 = vld [vmem:[%s3327_s0 + $0x20] sm:$0xff]  ;;  %v2378_v13 = vmov 2475754826  }
  0x14   :  { %2262 = vmatpush.xpose.msk.msra.mxu2 %vm63_vm0, %v58_v14  ;;  %v36_v31 = vld [vmem:[%s3327_s0 + $0xa8] sm:$0xff]  ;;  %v35_v34 = vld [vmem:[%s3327_s0 + $0xa0] sm:$0xff]  ;;  %v18_v36 = vld [vmem:[%s3327_s0 + $0x18] sm:$0xff] }
  0x15   :  { %v52_v32 = vld [vmem:[%s3327_s0 + $0x128] sm:$0xff]  ;;  %v51_v35 = vld [vmem:[%s3327_s0 + $0x120] sm:$0xff]  ;;  %v34_v37 = vld [vmem:[%s3327_s0 + $0x98] sm:$0xff] }
  0x16   :  { %2225 = vmatpush.xpose.msk.msra.mxu0 %vm63_vm0, %v25_v15  ;;  %2318 = vmatpush.xpose.msk.msra.mxu3 %vm63_vm0, %v25_v15  ;;  %v50_v38 = vld [vmem:[%s3327_s0 + $0x118] sm:$0xff]  ;;  %v17_v39 = vld [vmem:[%s3327_s0 + $0x10] sm:$0xff]  ;;  %v16_v42 = vld [vmem:[%s3327_s0 + $0x8] sm:$0xff]  ;;  %v2379_v15 = vmov 2131351028  }
  0x17   :  { %2244 = vmatpush.xpose.msk.msra.mxu1 %vm63_vm0, %v41_v16  ;;  %v33_v40 = vld [vmem:[%s3327_s0 + $0x90] sm:$0xff]  ;;  %v32_v43 = vld [vmem:[%s3327_s0 + $0x88] sm:$0xff]  ;;  %v15_v45 = vld [vmem:[%s3327_s0] sm:$0xff] }
  0x18   :  { %2263 = vmatpush.xpose.msk.msra.mxu2 %vm63_vm0, %v57_v17  ;;  %v49_v41 = vld [vmem:[%s3327_s0 + $0x110] sm:$0xff]  ;;  %v48_v44 = vld [vmem:[%s3327_s0 + $0x108] sm:$0xff]  ;;  %v31_v46 = vld [vmem:[%s3327_s0 + $0x80] sm:$0xff]  ;;  %v2380_v17 = vmov 2102212464  }
  0x19   :  { %v47_v47 = vld [vmem:[%s3327_s0 + $0x100] sm:$0xff]  ;;  %v13_v49 = vld [vmem:[%s3328_s1 + $0x8] sm:$0xff]  ;;  %v14_v50 = vld [vmem:[%s3328_s1 + $0x10] sm:$0xff] }
  0x1a   :  { %2226 = vmatpush.xpose.msk.msra.mxu0 %vm63_vm0, %v24_v18  ;;  %2319 = vmatpush.xpose.msk.msra.mxu3 %vm63_vm0, %v24_v18  ;;  %v12_v48 = vld [vmem:[%s3328_s1] sm:$0xff]  ;;  %s2384_s1 = smov [#allocation2]  }
  0x1b   :  { %2245 = vmatpush.xpose.msk.msra.mxu1 %vm63_vm0, %v40_v19  ;;  %v2381_v19 = vmov 920167782   ;;  %s2206_s26 = sshll.u32 %s2384_s1, 4  ;;  %s2207_s26 = int_to_ptr.vmem [resolvable:$true] %s2206_s26 }
  0x1c   :  { %2264 = vmatpush.xpose.msk.msra.mxu2 %vm63_vm0, %v56_v20 }
  0x1e   :  { %2227 = vmatpush.xpose.msk.msra.mxu0 %vm63_vm0, %v23_v21  ;;  %2320 = vmatpush.xpose.msk.msra.mxu3 %vm63_vm0, %v23_v21 }
  0x1f   :  { %2246 = vmatpush.xpose.msk.msra.mxu1 %vm63_vm0, %v39_v22 }
  0x20   :  { %2265 = vmatpush.xpose.msk.msra.mxu2 %vm63_vm0, %v55_v23 }
  0x22   :  { %2228 = vmatpush.xpose.msk.msra.mxu0 %vm63_vm0, %v22_v24  ;;  %2321 = vmatpush.xpose.msk.msra.mxu3 %vm63_vm0, %v22_v24 }
  0x23   :  { %2247 = vmatpush.xpose.msk.msra.mxu1 %vm63_vm0, %v38_v25 }
  0x24   :  { %2266 = vmatpush.xpose.msk.msra.mxu2 %vm63_vm0, %v54_v26 }
  0x26   :  { %2229 = vmatpush.xpose.msk.msra.mxu0 %vm63_vm0, %v21_v27  ;;  %2322 = vmatpush.xpose.msk.msra.mxu3 %vm63_vm0, %v21_v27 }
  0x27   :  { %2248 = vmatpush.xpose.msk.msra.mxu1 %vm63_vm0, %v37_v28  ;;  %v2382_v28 = vmov 1326507024  }
  0x28   :  { %2267 = vmatpush.xpose.msk.msra.mxu2 %vm63_vm0, %v53_v29 }
  0x2a   :  { %2230 = vmatpush.xpose.msk.msra.mxu0 %vm63_vm0, %v20_v30  ;;  %2323 = vmatpush.xpose.msk.msra.mxu3 %vm63_vm0, %v20_v30 }
  0x2b   :  { %2249 = vmatpush.xpose.msk.msra.mxu1 %vm63_vm0, %v36_v31 }
  0x2c   :  { %2268 = vmatpush.xpose.msk.msra.mxu2 %vm63_vm0, %v52_v32 }
  0x2e   :  { %2231 = vmatpush.xpose.msk.msra.mxu0 %vm63_vm0, %v19_v33  ;;  %2324 = vmatpush.xpose.msk.msra.mxu3 %vm63_vm0, %v19_v33 }
  0x2f   :  { %2250 = vmatpush.xpose.msk.msra.mxu1 %vm63_vm0, %v35_v34 }
  0x30   :  { %2269 = vmatpush.xpose.msk.msra.mxu2 %vm63_vm0, %v51_v35 }
  0x32   :  { %2232 = vmatpush.xpose.msk.msra.mxu0 %vm63_vm0, %v18_v36  ;;  %2325 = vmatpush.xpose.msk.msra.mxu3 %vm63_vm0, %v18_v36 }
  0x33   :  { %2251 = vmatpush.xpose.msk.msra.mxu1 %vm63_vm0, %v34_v37 }
  0x34   :  { %2270 = vmatpush.xpose.msk.msra.mxu2 %vm63_vm0, %v50_v38 }
  0x36   :  { %2233 = vmatpush.xpose.msk.msra.mxu0 %vm63_vm0, %v17_v39  ;;  %2326 = vmatpush.xpose.msk.msra.mxu3 %vm63_vm0, %v17_v39 }
  0x37   :  { %2252 = vmatpush.xpose.msk.msra.mxu1 %vm63_vm0, %v33_v40 }
  0x38   :  { %2271 = vmatpush.xpose.msk.msra.mxu2 %vm63_vm0, %v49_v41 }
  0x3a   :  { %2234 = vmatpush.xpose.msk.msra.mxu0 %vm63_vm0, %v16_v42  ;;  %2327 = vmatpush.xpose.msk.msra.mxu3 %vm63_vm0, %v16_v42 }
  0x3b   :  { %2253 = vmatpush.xpose.msk.msra.mxu1 %vm63_vm0, %v32_v43 }
  0x3c   :  { %2272 = vmatpush.xpose.msk.msra.mxu2 %vm63_vm0, %v48_v44 }
  0x3e   :  { %2235 = vmatpush.xpose.msk.msra.mxu0 %vm63_vm0, %v15_v45  ;;  %2328 = vmatpush.xpose.msk.msra.mxu3 %vm63_vm0, %v15_v45 }
  0x3f   :  { %2254 = vmatpush.xpose.msk.msra.mxu1 %vm63_vm0, %v31_v46 }
  0x40   :  { %2273 = vmatpush.xpose.msk.msra.mxu2 %vm63_vm0, %v47_v47 }
  0x41   :  { %2236 = vmatmul.msk.f32.vlgmr.msra.gmra.mxu0 %vm63_vm0, %v12_v48  ;;  %2237 = vmatmul.msk.f32.vlgmr.msra.gmra.mxu3 %vm63_vm0, %v13_v49 }
  0x42   :  { %2255 = vmatmul.msk.f32.vlgmr.msra.gmra.mxu1 %vm63_vm0, %v12_v48 }
  0x43   :  { %2274 = vmatmul.msk.f32.vlgmr.msra.gmra.mxu2 %vm63_vm0, %v12_v48 }
  0x49   :  { %2238 = vmatmul.msk.f32.gmra.mxu3 %vm63_vm0, %v14_v50 }
  0x4a   :  { %2256 = vmatmul.msk.f32.gmra.mxu1 %vm63_vm0, %v13_v49 }
  0x4b   :  { %2275 = vmatmul.msk.f32.gmra.mxu2 %vm63_vm0, %v13_v49 }
  0x52   :  { %2257 = vmatmul.msk.f32.gmra.mxu1 %vm63_vm0, %v14_v50 }
  0x53   :  { %2276 = vmatmul.msk.f32.gmra.mxu2 %vm63_vm0, %v14_v50 }
  0xbe   :  { %v2628_v51 = vpop.f32.mrf.mxu0 }
  0xbf   :  { %v300_v52 = vand.u32 2147483647, %v2628_v51  ;;  %v303_v53 = vand.u32 2139095040, %v2628_v51  ;;  %v2632_v54 = vpop.f32.mrf.mxu1 }
  0xc0   :  { %v455_v55 = vand.u32 2147483647, %v2632_v54  ;;  %v458_v56 = vand.u32 2139095040, %v2632_v54 }
  0xc1   :  { %v304_v57 = vshrl.u32 %v303_v53, 23  ;;  %v307_v58 = vand.u32 8388607, %v300_v52 }
  0xc2   :  { %v459_v59 = vshrl.u32 %v458_v56, 23  ;;  %v462_v62 = vand.u32 8388607, %v455_v55 }
  0xc3   :  { %v2277_v60 = vadd.s32 4294967169, %v304_v57  ;;  %v308_v63 = vor.u32 8388608, %v307_v58 }
  0xc4   :  { %v2280_v61 = vadd.s32 4294967169, %v459_v59  ;;  %v463_v3 = vor.u32 8388608, %v462_v62  ;;  %v2642_v7 = vpop.f32.mrf.mxu3 }
  0xc5   :  { %v310_v0 = vadd.s32 1, %v2277_v60  ;;  %v2640_v5 = vshll.u32 %v308_v63, 8  ;;  %v1703_v22 = vand.u32 2139095040, %v2642_v7 }
  0xc6   :  { %v465_v1 = vadd.s32 1, %v2280_v61  ;;  %v2653_v21 = vshll.u32 %v463_v3, 8 }
  0xc7   :  { %vm311_vm1 = vcmp.gt.s32.totalorder %v310_v0, 0  ;;  %v349_v26 = vand.u32 65535, %v2640_v5  ;;  %v350_v36 = vshrl.u32 %v2640_v5, 16 }
  0xc8   :  { %v312_v2 = vsel %vm311_vm1, %v310_v0, 0  ;;  %vm466_vm2 = vcmp.gt.s32.totalorder %v465_v1, 0  ;;  %v2698_v53 = vand.u32 65535, %v2653_v21 }
  0xc9   :  { %v314_v4 = vand.u32 31, %v312_v2  ;;  %v467_v6 = vsel %vm466_vm2, %v465_v1, 0  ;;  %v2644_v8 = vshrl.u32 %v312_v2, 5 }
  0xca   :  { %v2646_v9 = vand.u32 31, %v467_v6  ;;  %v2704_v62 = vshrl.u32 %v467_v6, 5 }
  0xcb   :  { %v315_v10 = vsub.s32 32, %v314_v4  ;;  %v317_v12 = vshll.u32 %v2377_v11, %v314_v4  ;;  %v320_v14 = vshll.u32 %v2378_v13, %v314_v4  ;;  %v323_v16 = vshll.u32 %v2379_v15, %v314_v4 }
  0xcc   :  { %v326_v18 = vshll.u32 %v2380_v17, %v314_v4  ;;  %v329_v20 = vshll.u32 %v2381_v19, %v314_v4  ;;  %vm332_vm3 = vcmp.lt.s32.totalorder %v2644_v8, 1  ;;  %vm335_vm4 = vcmp.lt.s32.totalorder %v2644_v8, 4 }
  0xcd   :  { %v318_v23 = vshrl.u32 %v2378_v13, %v315_v10  ;;  %v321_v24 = vshrl.u32 %v2379_v15, %v315_v10  ;;  %v324_v25 = vshrl.u32 %v2380_v17, %v315_v10  ;;  %v327_v27 = vshrl.u32 %v2381_v19, %v315_v10 }
  0xce   :  { %v330_v29 = vshrl.u32 %v2382_v28, %v315_v10  ;;  %v2665_v33 = vsub.s32 32, %v2646_v9  ;;  %vm334_vm5 = vcmp.lt.s32.totalorder %v2644_v8, 3  ;;  %v316_v37 = vshrl.u32 %v2377_v11, %v315_v10 }
  0xcf   :  { %v319_v30 = vor.u32 %v318_v23, %v317_v12  ;;  %v322_v31 = vor.u32 %v321_v24, %v320_v14  ;;  %v325_v32 = vor.u32 %v324_v25, %v323_v16  ;;  %v328_v34 = vor.u32 %v327_v27, %v326_v18 }
  0xd0   :  { %v331_v35 = vor.u32 %v330_v29, %v329_v20  ;;  %vm333_vm6 = vcmp.lt.s32.totalorder %v2644_v8, 2  ;;  %v472_v42 = vshll.u32 %v2377_v11, %v2646_v9  ;;  %v475_v43 = vshll.u32 %v2378_v13, %v2646_v9 }
  0xd1   :  { %v340_v38 = vsel %vm332_vm3, %v319_v30, %v322_v31  ;;  %v344_v39 = vsel %vm332_vm3, %v322_v31, %v325_v32  ;;  %v341_v40 = vsel %vm335_vm4, %v328_v34, 920167782  ;;  %v337_v44 = vsel %vm335_vm4, %v325_v32, 2102212464 }
  0xd2   :  { %v345_v41 = vsel %vm335_vm4, %v331_v35, 1326507024  ;;  %v342_v45 = vsel %vm334_vm5, %v325_v32, %v341_v40  ;;  %v473_v47 = vshrl.u32 %v2378_v13, %v2665_v33  ;;  %v476_v50 = vshrl.u32 %v2379_v15, %v2665_v33 }
  0xd3   :  { %v346_v46 = vsel %vm334_vm5, %v328_v34, %v345_v41  ;;  %v343_v48 = vsel %vm333_vm6, %v340_v38, %v342_v45  ;;  %v336_v60 = vsel %vm332_vm3, %v316_v37, %v319_v30  ;;  %v338_v61 = vsel %vm334_vm5, %v322_v31, %v337_v44 }
  0xd4   :  { %v347_v49 = vsel %vm333_vm6, %v344_v39, %v346_v46  ;;  %v373_v58 = vand.u32 65535, %v343_v48  ;;  %v374_v59 = vshrl.u32 %v343_v48, 16  ;;  %v2706_v63 = vor.u32 %v473_v47, %v472_v42 }
  0xd5   :  { %v351_v56 = vand.u32 65535, %v347_v49  ;;  %v352_v57 = vshrl.u32 %v347_v49, 16  ;;  %v2708_v3 = vor.u32 %v476_v50, %v475_v43  ;;  %v478_v14 = vshll.u32 %v2379_v15, %v2646_v9 }
  0xd6   :  { %v375_v4 = vmul.u32 %v373_v58, %v349_v26  ;;  %v376_v10 = vmul.u32 %v374_v59, %v349_v26  ;;  %v377_v12 = vmul.u32 %v373_v58, %v350_v36  ;;  %v479_v6 = vshrl.u32 %v2380_v17, %v2665_v33 }
  0xd7   :  { %v353_v0 = vmul.u32 %v351_v56, %v349_v26  ;;  %v354_v1 = vmul.u32 %v352_v57, %v349_v26  ;;  %v355_v2 = vmul.u32 %v351_v56, %v350_v36  ;;  %v356_v16 = vmul.u32 %v352_v57, %v350_v36 }
  0xd8   :  { %v378_v24 = vmul.u32 %v374_v59, %v350_v36  ;;  %v379_v25 = vshll.u32 %v376_v10, 16  ;;  %v381_v27 = vshll.u32 %v377_v12, 16  ;;  %v481_v26 = vshll.u32 %v2380_v17, %v2646_v9 }
  0xd9   :  { %v357_v18 = vshll.u32 %v354_v1, 16  ;;  %v359_v20 = vshll.u32 %v355_v2, 16  ;;  %v358_v23 = vshrl.u32 %v354_v1, 16  ;;  %v360_v29 = vshrl.u32 %v355_v2, 16 }
  0xda   :  { %v2383_v31 = vmov 0   ;;  %vm383_vm8 = vc.u32 %v375_v4, %v379_v25  ;;  %v385_v34 = vadd.s32 %v379_v25, %v375_v4  ;;  %v482_v35 = vshrl.u32 %v2381_v19, %v2665_v33 }
  0xdb   :  { %vm361_vm7 = vc.u32 %v353_v0, %v357_v18  ;;  %v363_v30 = vadd.s32 %v357_v18, %v353_v0  ;;  %v384_v36 = vsel %vm383_vm8, 1, %v2383_v31  ;;  %v484_v38 = vshll.u32 %v2381_v19, %v2646_v9 }
  0xdc   :  { %v362_v32 = vsel %vm361_vm7, 1, %v2383_v31  ;;  %v386_v40 = vadd.s32 %v384_v36, %v378_v24  ;;  %vm387_vm10 = vc.u32 %v385_v34, %v381_v27  ;;  %v480_v41 = vor.u32 %v479_v6, %v478_v14 }
  0xdd   :  { %v364_v37 = vadd.s32 %v362_v32, %v356_v16  ;;  %vm365_vm9 = vc.u32 %v363_v30, %v359_v20  ;;  %v388_v43 = vsel %vm387_vm10, 1, %v2383_v31  ;;  %v483_v44 = vor.u32 %v482_v35, %v481_v26 }
  0xde   :  { %v366_v39 = vsel %vm365_vm9, 1, %v2383_v31  ;;  %v485_v45 = vshrl.u32 %v2382_v28, %v2665_v33  ;;  %v380_v46 = vshrl.u32 %v376_v10, 16  ;;  %v390_v47 = vadd.s32 %v388_v43, %v386_v40 }
  0xdf   :  { %v368_v42 = vadd.s32 %v366_v39, %v364_v37  ;;  %vm487_vm11 = vcmp.lt.s32.totalorder %v2704_v62, 1  ;;  %vm489_vm12 = vcmp.lt.s32.totalorder %v2704_v62, 3  ;;  %v382_v9 = vshrl.u32 %v377_v12, 16 }
  0xe0   :  { %v486_v49 = vor.u32 %v485_v45, %v484_v38  ;;  %vm490_vm13 = vcmp.lt.s32.totalorder %v2704_v62, 4  ;;  %v2729_v50 = vadd.s32 %v385_v34, %v381_v27  ;;  %v391_v56 = vadd.s32 %v390_v47, %v380_v46 }
  0xe1   :  { %v369_v48 = vadd.s32 %v368_v42, %v358_v23  ;;  %v495_v57 = vsel %vm487_vm11, %v2706_v63, %v2708_v3  ;;  %v496_v58 = vsel %vm490_vm13, %v483_v44, 920167782  ;;  %vm488_vm14 = vcmp.lt.s32.totalorder %v2704_v62, 2 }
  0xe2   :  { %v497_v0 = vsel %vm489_vm12, %v480_v41, %v496_v58  ;;  %v499_v1 = vsel %vm487_vm11, %v2708_v3, %v480_v41  ;;  %v339_v2 = vsel %vm333_vm6, %v336_v60, %v338_v61  ;;  %v392_v4 = vadd.s32 %v391_v56, %v382_v9 }
  0xe3   :  { %v2737_v59 = vadd.s32 %v369_v48, %v360_v29  ;;  %v498_v10 = vsel %vm488_vm14, %v495_v57, %v497_v0  ;;  %v500_v12 = vsel %vm490_vm13, %v486_v49, 1326507024  ;;  %v505_v16 = vshrl.u32 %v2653_v21, 16 }
  0xe4   :  { %v501_v14 = vsel %vm489_vm12, %v483_v44, %v500_v12  ;;  %v528_v18 = vand.u32 65535, %v498_v10  ;;  %v396_v20 = vadd.s32 1, %v392_v4  ;;  %v529_v60 = vshrl.u32 %v498_v10, 16 }
  0xe5   :  { %vm395_vm15 = vc.u32 %v2737_v59, %v2729_v50  ;;  %v502_v8 = vsel %vm488_vm14, %v499_v1, %v501_v14  ;;  %v1704_v61 = vshrl.u32 %v1703_v22, 23  ;;  %v393_v6 = vmul.u32 %v2640_v5, %v339_v2 }
  0xe6   :  { %v506_v23 = vand.u32 65535, %v502_v8  ;;  %v507_v24 = vshrl.u32 %v502_v8, 16  ;;  %v397_v25 = vsel %vm395_vm15, %v396_v20, %v392_v4  ;;  %v471_v27 = vshrl.u32 %v2377_v11, %v2665_v33 }
  0xe7   :  { %v531_v29 = vmul.u32 %v529_v60, %v2698_v53  ;;  %v532_v30 = vmul.u32 %v528_v18, %v505_v16  ;;  %v398_v26 = vadd.s32 %v397_v25, %v393_v6  ;;  %v492_v32 = vsel %vm490_vm13, %v480_v41, 2102212464 }
  0xe8   :  { %v509_v34 = vmul.u32 %v507_v24, %v2698_v53  ;;  %v510_v35 = vmul.u32 %v506_v23, %v505_v16  ;;  %v530_v22 = vmul.u32 %v528_v18, %v2698_v53  ;;  %v533_v37 = vmul.u32 %v529_v60, %v505_v16 }
  0xe9   :  { %v534_v5 = vshll.u32 %v531_v29, 16  ;;  %v2304_v36 = vadd.s32 4294967169, %v1704_v61  ;;  %v399_v38 = vadd.s32 536870912, %v398_v26  ;;  %v508_v39 = vmul.u32 %v506_v23, %v2698_v53 }
  0xea   :  { %v511_v40 = vmul.u32 %v507_v24, %v505_v16  ;;  %v512_v33 = vshll.u32 %v509_v34, 16  ;;  %v514_v42 = vshll.u32 %v510_v35, 16  ;;  %v536_v43 = vshll.u32 %v532_v30, 16 }
  0xeb   :  { %vm538_vm0 = vc.u32 %v530_v22, %v534_v5  ;;  %v540_v44 = vadd.s32 %v534_v5, %v530_v22  ;;  %v400_v45 = vshrl.u32 %v399_v38, 30  ;;  %v491_v53 = vsel %vm487_vm11, %v471_v27, %v2706_v63 }
  0xec   :  { %vm516_vm1 = vc.u32 %v508_v39, %v512_v33  ;;  %v518_v41 = vadd.s32 %v512_v33, %v508_v39  ;;  %v539_v46 = vsel %vm538_vm0, 1, %v2383_v31  ;;  %v493_v56 = vsel %vm489_vm12, %v2708_v3, %v492_v32 }
  0xed   :  { %v517_v47 = vsel %vm516_vm1, 1, %v2383_v31  ;;  %v541_v48 = vadd.s32 %v539_v46, %v533_v37  ;;  %vm542_vm2 = vc.u32 %v540_v44, %v536_v43  ;;  %v401_v9 = vshll.u32 %v400_v45, 30 }
  0xee   :  { %v519_v49 = vadd.s32 %v517_v47, %v511_v40  ;;  %vm520_vm3 = vc.u32 %v518_v41, %v514_v42  ;;  %v543_v58 = vsel %vm542_vm2, 1, %v2383_v31  ;;  %v1710_v0 = vadd.s32 1, %v2304_v36 }
  0xef   :  { %v521_v57 = vsel %vm520_vm3, 1, %v2383_v31  ;;  %v402_v1 = vsub.s32 %v398_v26, %v401_v9  ;;  %v513_v2 = vshrl.u32 %v509_v34, 16  ;;  %v545_v10 = vadd.s32 %v543_v58, %v541_v48 }
  0xf0   :  { %v523_v4 = vadd.s32 %v521_v57, %v519_v49  ;;  %vm302_vm4 = vcmp.lt.s32.totalorder %v2628_v51, 0  ;;  %v424_v12 = vsub.s32 4, %v400_v45  ;;  %v535_v14 = vshrl.u32 %v531_v29, 16 }
  0xf1   :  { %vm1711_vm5 = vcmp.gt.s32.totalorder %v1710_v0, 0  ;;  %vm403_vm6 = vcmp.lt.s32.totalorder %v402_v1, 0  ;;  %v404_v63 = vsub.s32 0, %v402_v1  ;;  %v515_v16 = vshrl.u32 %v510_v35, 16 }
  0xf2   :  { %v524_v18 = vadd.s32 %v523_v4, %v513_v2  ;;  %v494_v3 = vsel %vm488_vm14, %v491_v53, %v493_v56  ;;  %v537_v20 = vshrl.u32 %v532_v30, 16  ;;  %v546_v8 = vadd.s32 %v545_v10, %v535_v14 }
  0xf3   :  { %v1712_v60 = vsel %vm1711_vm5, %v1710_v0, 0  ;;  %v405_v61 = vsel %vm403_vm6, %v404_v63, %v402_v1  ;;  %v2784_v23 = vadd.s32 %v540_v44, %v536_v43  ;;  %v1700_v24 = vand.u32 2147483647, %v2642_v7 }
  0xf4   :  { %v2782_v6 = vadd.s32 %v524_v18, %v515_v16  ;;  %v406_v25 = vclz %v405_v61  ;;  %v425_v27 = vsel %vm302_vm4, %v424_v12, %v400_v45  ;;  %v547_v29 = vadd.s32 %v546_v8, %v537_v20 }
  0xf5   :  { %v1714_v26 = vand.u32 31, %v1712_v60  ;;  %vm2791_vm7 = vcmp.le.f32.partialorder %v300_v52, 0.7853982  ;;  %v394_v30 = vadd.s32 %v2729_v50, %v2737_v59  ;;  %v548_v32 = vmul.u32 %v2653_v21, %v494_v3  ;;  %v2824_v3 = vpop.f32.mrf.mxu2 }
  0xf6   :  { %v2278_v34 = vadd.s32 4294967294, %v406_v25  ;;  %vm550_vm8 = vc.u32 %v2782_v6, %v2784_v23  ;;  %v551_v35 = vadd.s32 1, %v547_v29  ;;  %v427_v37 = vsel %vm2791_vm7, 0, %v425_v27 }
  0xf7   :  { %v1715_v22 = vsub.s32 32, %v1714_v26  ;;  %v1707_v52 = vand.u32 8388607, %v1700_v24  ;;  %v2804_v5 = vshrl.u32 %v1712_v60, 5  ;;  %v1717_v36 = vshll.u32 %v2377_v11, %v1714_v26 }
  0xf8   :  { %vm2279_vm9 = vcmp.lt.s32.totalorder %v2278_v34, 0  ;;  %v552_v50 = vsel %vm550_vm8, %v551_v35, %v547_v29  ;;  %v1720_v21 = vshll.u32 %v2378_v13, %v1714_v26  ;;  %v1726_v59 = vshll.u32 %v2380_v17, %v1714_v26 }
  0xf9   :  { %v409_v38 = vsel %vm2279_vm9, 0, %v2278_v34  ;;  %v553_v39 = vadd.s32 %v552_v50, %v548_v32  ;;  %v1718_v40 = vshrl.u32 %v2378_v13, %v1715_v22  ;;  %v1721_v33 = vshrl.u32 %v2379_v15, %v1715_v22 }
  0xfa   :  { %v410_v42 = vsub.s32 32, %v409_v38  ;;  %v414_v43 = vsub.s32 4294967266, %v409_v38  ;;  %v1723_v44 = vshll.u32 %v2379_v15, %v1714_v26  ;;  %v1724_v45 = vshrl.u32 %v2380_v17, %v1715_v22 }
  0xfb   :  { %v411_v41 = vshll.u32 %v402_v1, %v409_v38  ;;  %v554_v46 = vadd.s32 536870912, %v553_v39  ;;  %v1708_v47 = vor.u32 8388608, %v1707_v52  ;;  %v1727_v48 = vshrl.u32 %v2381_v19, %v1715_v22 }
  0xfc   :  { %v412_v9 = vshrl.u32 %v394_v30, %v410_v42  ;;  %v415_v53 = vadd.s32 127, %v414_v43  ;;  %v1729_v49 = vshll.u32 %v2381_v19, %v1714_v26  ;;  %v1730_v56 = vshrl.u32 %v2382_v28, %v1715_v22 }
  0xfd   :  { %v2816_v57 = vshrl.u32 %v554_v46, 30  ;;  %v1719_v58 = vor.u32 %v1718_v40, %v1717_v36  ;;  %v2818_v0 = vor.u32 %v1721_v33, %v1720_v21  ;;  %v1728_v2 = vor.u32 %v1727_v48, %v1726_v59 }
  0xfe   :  { %v413_v4 = vor.u32 %v412_v9, %v411_v41  ;;  %v416_v10 = vshll.u32 %v415_v53, 23  ;;  %v1725_v12 = vor.u32 %v1724_v45, %v1723_v44  ;;  %vm1732_vm10 = vcmp.lt.s32.totalorder %v2804_v5, 1 }
  0xff   :  { %v295_v1 = vlaneseq  ;;  %v556_v14 = vshll.u32 %v2816_v57, 30  ;;  %vm1734_vm11 = vcmp.lt.s32.totalorder %v2804_v5, 3  ;;  %vm1735_vm12 = vcmp.lt.s32.totalorder %v2804_v5, 4 }
 0x100   :  { %v417_v63 = vor.u32 4788187, %v416_v10  ;;  %v444_v16 = vadd.s32 3, %v427_v37  ;;  %v1731_v18 = vor.u32 %v1730_v56, %v1729_v49  ;;  %vm1733_vm13 = vcmp.lt.s32.totalorder %v2804_v5, 2 }
 0x101   :  { %v2826_v20 = vsub.s32 %v553_v39, %v556_v14  ;;  %v1740_v8 = vsel %vm1732_vm10, %v1719_v58, %v2818_v0  ;;  %v1741_v60 = vsel %vm1735_vm12, %v1728_v2, 920167782  ;;  %v420_v25 = vcvt.s32.f32 %v413_v4 }
 0x102   :  { %v418_v61 = vand.u32 2147483647, %v417_v63  ;;  %v1742_v27 = vsel %vm1734_vm11, %v1725_v12, %v1741_v60  ;;  %v2836_v29 = vshll.u32 %v1708_v47, 8  ;;  %v2838_v26 = vshrl.u32 %v295_v1, 7 }
 0x103   :  { %vm558_vm14 = vcmp.lt.s32.totalorder %v2826_v20, 0  ;;  %v559_v30 = vsub.s32 0, %v2826_v20  ;;  %v610_v32 = vand.u32 2147483647, %v2824_v3  ;;  %v1743_v35 = vsel %vm1733_vm13, %v1740_v8, %v1742_v27 }
 0x104   :  { %v421_v34 = vmul.f32 %v420_v25, %v418_v61  ;;  %v1744_v37 = vsel %vm1732_vm10, %v2818_v0, %v1725_v12  ;;  %v1745_v52 = vsel %vm1735_vm12, %v1731_v18, 1326507024  ;;  %v2850_v36 = vand.u32 3, %v444_v16 }
 0x105   :  { %v560_v50 = vsel %vm558_vm14, %v559_v30, %v2826_v20  ;;  %v1716_v21 = vshrl.u32 %v2377_v11, %v1715_v22  ;;  %v1746_v59 = vsel %vm1734_vm11, %v1728_v2, %v1745_v52  ;;  %v1749_v33 = vand.u32 65535, %v2836_v29 }
 0x106   :  { %v422_v38 = vxor.u32 2147483648, %v421_v34  ;;  %v561_v39 = vclz %v560_v50  ;;  %v1747_v40 = vsel %vm1733_vm13, %v1744_v37, %v1746_v59  ;;  %v1750_v42 = vshrl.u32 %v2836_v29, 16 }
 0x107   :  { %v1751_v43 = vand.u32 65535, %v1747_v40  ;;  %v1773_v44 = vand.u32 65535, %v1743_v35  ;;  %v1774_v45 = vshrl.u32 %v1743_v35, 16  ;;  %v549_v22 = vadd.s32 %v2784_v23, %v2782_v6 }
 0x108   :  { %v423_v41 = vsel %vm302_vm4, %v422_v38, %v421_v34  ;;  %v2281_v46 = vadd.s32 4294967294, %v561_v39  ;;  %v1752_v47 = vshrl.u32 %v1747_v40, 16  ;;  %v579_v9 = vsub.s32 4, %v2816_v57 }
 0x109   :  { %v2867_v48 = vsel %vm2791_vm7, %v2628_v51, %v423_v41  ;;  %v2872_v53 = vsel %vm1732_vm10, %v1716_v21, %v1719_v58  ;;  %v2874_v49 = vmul.u32 %v1751_v43, %v1750_v42  ;;  %v1737_v6 = vsel %vm1735_vm12, %v1725_v12, 2102212464 }
 0x10a   :  { %v428_v56 = vmul.f32 %v2867_v48, %v2867_v48  ;;  %vm2282_vm15 = vcmp.lt.s32.totalorder %v2281_v46, 0  ;;  %v1754_v23 = vmul.u32 %v1752_v47, %v1749_v33  ;;  %v1753_v62 = vmul.u32 %v1751_v43, %v1749_v33 }
 0x10b   :  { %v564_v2 = vsel %vm2282_vm15, 0, %v2281_v46  ;;  %v1775_v4 = vmul.u32 %v1773_v44, %v1749_v33  ;;  %v2880_v10 = vmul.u32 %v1774_v45, %v1749_v33  ;;  %v1756_v58 = vmul.u32 %v1752_v47, %v1750_v42 }
 0x10c   :  { %v429_v1 = vmul.f32 -0.001358992, %v428_v56  ;;  %v436_v14 = vmul.f32 -0.00019511016, %v428_v56  ;;  %v565_v63 = vsub.s32 32, %v564_v2  ;;  %vm457_vm0 = vcmp.lt.s32.totalorder %v2632_v54, 0 }
 0x10d   :  { %v569_v16 = vsub.s32 4294967266, %v564_v2  ;;  %v1757_v18 = vshll.u32 %v1754_v23, 16  ;;  %v1759_v8 = vshll.u32 %v2874_v49, 16  ;;  %v2884_v60 = vmul.u32 %v1773_v44, %v1750_v42 }
 0x10e   :  { %v430_v61 = vadd.f32 0.041655596, %v429_v1  ;;  %v437_v12 = vadd.f32 0.008332121, %v436_v14  ;;  %v566_v25 = vshll.u32 %v2826_v20, %v564_v2  ;;  %v567_v27 = vshrl.u32 %v549_v22, %v565_v63 }
 0x10f   :  { %v570_v30 = vadd.s32 127, %v569_v16  ;;  %vm1761_vm1 = vc.u32 %v1753_v62, %v1757_v18  ;;  %v1763_v34 = vadd.s32 %v1757_v18, %v1753_v62  ;;  %v1779_v35 = vshll.u32 %v2880_v10, 16 }
 0x110   :  { %v431_v37 = vmul.f32 %v430_v61, %v428_v56  ;;  %v438_v52 = vmul.f32 %v437_v12, %v428_v56  ;;  %v1758_v50 = vshrl.u32 %v1754_v23, 16  ;;  %v1762_v21 = vsel %vm1761_vm1, 1, %v2383_v31 }
 0x111   :  { %vm2891_vm2 = vcmp.le.f32.partialorder %v455_v55, 0.7853982  ;;  %v568_v38 = vor.u32 %v567_v27, %v566_v25  ;;  %v571_v39 = vshll.u32 %v570_v30, 23  ;;  %v1764_v20 = vadd.s32 %v1762_v21, %v1756_v58 }
 0x112   :  { %vm1765_vm3 = vc.u32 %v1763_v34, %v1759_v8  ;;  %v432_v40 = vadd.f32 -0.4999988, %v431_v37  ;;  %v439_v33 = vadd.f32 -0.16666654, %v438_v52  ;;  %v1778_v44 = vmul.u32 %v1774_v45, %v1750_v42 }
 0x113   :  { %v1766_v43 = vsel %vm1765_vm3, 1, %v2383_v31  ;;  %vm447_vm4 = vcmp.eq.s32.totalorder %v2850_v36, 0  ;;  %v572_v41 = vor.u32 4788187, %v571_v39  ;;  %v1781_v46 = vshll.u32 %v2884_v60, 16 }
 0x114   :  { %v1768_v22 = vadd.s32 %v1766_v43, %v1764_v20  ;;  %vm1783_vm5 = vc.u32 %v1775_v4, %v1779_v35  ;;  %vm298_vm6 = vcmp.ge.s32.totalorder %v2838_v26, 4  ;;  %v433_v55 = vmul.f32 %v432_v40, %v428_v56 }
 0x115   :  { %v440_v47 = vmul.f32 %v439_v33, %v428_v56  ;;  %vm446_vm7 = vcmp.lt.s32.totalorder %v2850_v36, 2  ;;  %v1784_v23 = vsel %vm1783_vm5, 1, %v2383_v31  ;;  %v1785_v2 = vadd.s32 %v1779_v35, %v1775_v4 }
 0x116   :  { %vm443_vm8 = vweird.f32 %v2628_v51  ;;  %v573_v62 = vand.u32 2147483647, %v572_v41  ;;  %v575_v42 = vcvt.s32.f32 %v568_v38  ;;  %v1769_v45 = vadd.s32 %v1768_v22, %v1758_v50 }
 0x117   :  { %v1786_v1 = vadd.s32 %v1784_v23, %v1778_v44  ;;  %v434_v14 = vadd.f32 1.0, %v433_v55  ;;  %v441_v63 = vadd.f32 1.0, %v440_v47  ;;  %v580_v58 = vsel %vm457_vm0, %v579_v9, %v2816_v57 }
 0x118   :  { %vm1787_vm9 = vc.u32 %v1785_v2, %v1781_v46  ;;  %v576_v16 = vmul.f32 %v575_v42, %v573_v62  ;;  %v1738_v56 = vsel %vm1734_vm11, %v2818_v0, %v1737_v6  ;;  %v1760_v4 = vshrl.u32 %v2874_v49, 16 }
 0x119   :  { %v1788_v18 = vsel %vm1787_vm9, 1, %v2383_v31  ;;  %v442_v8 = vmul.f32 %v441_v63, %v2867_v48  ;;  %v451_v61 = vxor.u32 2147483648, %v434_v14  ;;  %v1780_v12 = vshrl.u32 %v2880_v10, 16 }
 0x11a   :  { %v1790_v25 = vadd.s32 %v1788_v18, %v1786_v1  ;;  %vm450_vm10 = vcmp.eq.s32.totalorder %v2850_v36, 2  ;;  %v577_v27 = vxor.u32 2147483648, %v576_v16  ;;  %v2913_v57 = vadd.s32 %v1769_v45, %v1760_v4 }
 0x11b   :  { %v613_v9 = vand.u32 2139095040, %v2824_v3  ;;  %v448_v30 = vxor.u32 2147483648, %v442_v8  ;;  %v582_v0 = vsel %vm2891_vm2, 0, %v580_v58  ;;  %v1782_v49 = vshrl.u32 %v2884_v60, 16  ;;  %v2947_v58 = vpop.f32.mrf.mxu1 }
 0x11c   :  { %v1791_v6 = vadd.s32 %v1790_v25, %v1780_v12  ;;  %v578_v48 = vsel %vm457_vm0, %v577_v27, %v576_v16  ;;  %v1739_v10 = vsel %vm1733_vm13, %v2872_v53, %v1738_v56  ;;  %v2924_v34 = vadd.s32 %v1785_v2, %v1781_v46 }
 0x11d   :  { %v614_v35 = vshrl.u32 %v613_v9, 23  ;;  %v449_v37 = vsel %vm447_vm4, %v434_v14, %v448_v30  ;;  %v452_v52 = vsel %vm450_vm10, %v451_v61, %v442_v8  ;;  %v581_v50 = vsel %vm2891_vm2, %v2632_v54, %v578_v48 }
 0x11e   :  { %v1792_v60 = vadd.s32 %v1791_v6, %v1782_v49  ;;  %v453_v21 = vsel %vm446_vm7, %v449_v37, %v452_v52  ;;  %v583_v38 = vmul.f32 %v581_v50, %v581_v50  ;;  %vm1795_vm11 = vc.u32 %v2913_v57, %v2924_v34 }
 0x11f   :  { %v2283_v5 = vadd.s32 4294967169, %v614_v35  ;;  %v454_v53 = vsel %vm443_vm8, nan, %v453_v21  ;;  %v599_v39 = vadd.s32 3, %v582_v0  ;;  %v1793_v20 = vmul.u32 %v2836_v29, %v1739_v10 }
 0x120   :  { %v1796_v40 = vadd.s32 1, %v1792_v60  ;;  %v1230_v59 = vsel %vm298_vm6, %v454_v53, %v2628_v51  ;;  %v584_v33 = vmul.f32 -0.001358992, %v583_v38  ;;  %v591_v43 = vmul.f32 -0.00019511016, %v583_v38 }
 0x121   :  { %v620_v36 = vadd.s32 1, %v2283_v5  ;;  %2193 = vst [vmem:[#allocation2] sm:$0xff] %v1230_v59  ;;  %v617_v41 = vand.u32 8388607, %v610_v32  ;;  %v600_v2 = vand.u32 3, %v599_v39  ;;  %vm598_vm15 = vweird.f32 %v2632_v54 }
 0x122   :  { %v1797_v44 = vsel %vm1795_vm11, %v1796_v40, %v1792_v60  ;;  %v585_v22 = vadd.f32 0.041655596, %v584_v33  ;;  %v592_v46 = vadd.f32 0.008332121, %v591_v43  ;;  %v1857_v9 = vand.u32 2139095040, %v2947_v58 }
 0x123   :  { %v1798_v55 = vadd.s32 %v1797_v44, %v1793_v20  ;;  %vm621_vm12 = vcmp.gt.s32.totalorder %v620_v36, 0  ;;  %v618_v42 = vor.u32 8388608, %v617_v41  ;;  %vm601_vm13 = vcmp.lt.s32.totalorder %v600_v2, 2 }
 0x124   :  { %v622_v47 = vsel %vm621_vm12, %v620_v36, 0  ;;  %v586_v23 = vmul.f32 %v585_v22, %v583_v38  ;;  %v593_v29 = vmul.f32 %v592_v46, %v583_v38  ;;  %vm602_vm14 = vcmp.eq.s32.totalorder %v600_v2, 0 }
 0x125   :  { %v1799_v62 = vadd.s32 536870912, %v1798_v55  ;;  %v624_v45 = vand.u32 31, %v622_v47  ;;  %vm605_vm0 = vcmp.eq.s32.totalorder %v600_v2, 2  ;;  %v2955_v61 = vshll.u32 %v618_v42, 8 }
 0x126   :  { %v587_v51 = vadd.f32 -0.4999988, %v586_v23  ;;  %v594_v1 = vadd.f32 -0.16666654, %v593_v29  ;;  %v2958_v30 = vshrl.u32 %v622_v47, 5  ;;  %v1858_v46 = vshrl.u32 %v1857_v9, 23 }
 0x127   :  { %v2943_v14 = vshrl.u32 %v1799_v62, 30  ;;  %v2945_v63 = vsub.s32 32, %v624_v45  ;;  %v627_v0 = vshll.u32 %v2377_v11, %v624_v45  ;;  %v630_v49 = vshll.u32 %v2378_v13, %v624_v45 }
 0x128   :  { %v588_v16 = vmul.f32 %v587_v51, %v583_v38  ;;  %v595_v56 = vmul.f32 %v594_v1, %v583_v38  ;;  %v633_v60 = vshll.u32 %v2379_v15, %v624_v45  ;;  %v636_v53 = vshll.u32 %v2380_v17, %v624_v45 }
 0x129   :  { %v1801_v4 = vshll.u32 %v2943_v14, 30  ;;  %v628_v18 = vshrl.u32 %v2378_v13, %v2945_v63  ;;  %v631_v8 = vshrl.u32 %v2379_v15, %v2945_v63  ;;  %v634_v6 = vshrl.u32 %v2380_v17, %v2945_v63 }
 0x12a   :  { %v589_v12 = vadd.f32 1.0, %v588_v16  ;;  %v596_v25 = vadd.f32 1.0, %v595_v56  ;;  %v637_v21 = vshrl.u32 %v2381_v19, %v2945_v63  ;;  %v640_v39 = vshrl.u32 %v2382_v28, %v2945_v63 }
 0x12b   :  { %v1802_v27 = vsub.s32 %v1798_v55, %v1801_v4  ;;  %v629_v37 = vor.u32 %v628_v18, %v627_v0  ;;  %v2964_v52 = vor.u32 %v631_v8, %v630_v49  ;;  %v635_v40 = vor.u32 %v634_v6, %v633_v60 }
 0x12c   :  { %v597_v48 = vmul.f32 %v596_v25, %v581_v50  ;;  %v606_v10 = vxor.u32 2147483648, %v589_v12  ;;  %v1794_v50 = vadd.s32 %v2924_v34, %v2913_v57  ;;  %v659_v59 = vand.u32 65535, %v2955_v61 }
 0x12d   :  { %vm1803_vm1 = vcmp.lt.s32.totalorder %v1802_v27, 0  ;;  %v1804_v35 = vsub.s32 0, %v1802_v27  ;;  %v638_v36 = vor.u32 %v637_v21, %v636_v53  ;;  %v639_v44 = vshll.u32 %v2381_v19, %v624_v45 }
 0x12e   :  { %v603_v38 = vxor.u32 2147483648, %v597_v48  ;;  %v607_v43 = vsel %vm605_vm0, %v606_v10, %v597_v48  ;;  %vm642_vm2 = vcmp.lt.s32.totalorder %v2958_v30, 1  ;;  %vm645_vm3 = vcmp.lt.s32.totalorder %v2958_v30, 4 }
 0x12f   :  { %v1805_v5 = vsel %vm1803_vm1, %v1804_v35, %v1802_v27  ;;  %v641_v34 = vor.u32 %v640_v39, %v639_v44  ;;  %v650_v55 = vsel %vm642_vm2, %v629_v37, %v2964_v52  ;;  %vm644_vm5 = vcmp.lt.s32.totalorder %v2958_v30, 3 }
 0x130   :  { %v1806_v20 = vclz %v1805_v5  ;;  %v604_v33 = vsel %vm602_vm14, %v589_v12, %v603_v38  ;;  %v651_v23 = vsel %vm645_vm3, %v638_v36, 920167782  ;;  %vm643_vm7 = vcmp.lt.s32.totalorder %v2958_v30, 2 }
 0x131   :  { %v608_v41 = vsel %vm601_vm13, %v604_v33, %v607_v43  ;;  %v652_v2 = vsel %vm644_vm5, %v635_v40, %v651_v23  ;;  %v660_v62 = vshrl.u32 %v2955_v61, 16  ;;  %v654_v51 = vsel %vm642_vm2, %v2964_v52, %v635_v40 }
 0x132   :  { %v2305_v22 = vadd.s32 4294967294, %v1806_v20  ;;  %v609_v57 = vsel %vm598_vm15, nan, %v608_v41  ;;  %v655_v1 = vsel %vm645_vm3, %v641_v34, 1326507024  ;;  %v2307_v4 = vadd.s32 4294967169, %v1858_v46 }
 0x133   :  { %v1231_v47 = vsel %vm298_vm6, %v609_v57, %v2632_v54  ;;  %v653_v54 = vsel %vm643_vm7, %v650_v55, %v652_v2  ;;  %v656_v25 = vsel %vm644_vm5, %v638_v36, %v655_v1  ;;  %v626_v9 = vshrl.u32 %v2377_v11, %v2945_v63 }
 0x134   :  { %vm2306_vm4 = vcmp.lt.s32.totalorder %v2305_v22, 0  ;;  %2194 = vst [vmem:[#allocation2 + $0x8] sm:$0xff] %v1231_v47  ;;  %v683_v16 = vand.u32 65535, %v653_v54  ;;  %v684_v56 = vshrl.u32 %v653_v54, 16  ;;  %v657_v0 = vsel %vm643_vm7, %v654_v51, %v656_v25 }
 0x135   :  { %v1809_v29 = vsel %vm2306_vm4, 0, %v2305_v22  ;;  %v661_v35 = vand.u32 65535, %v657_v0  ;;  %v662_v60 = vshrl.u32 %v657_v0, 16  ;;  %vm1702_vm8 = vcmp.lt.s32.totalorder %v2642_v7, 0 }
 0x136   :  { %v1810_v42 = vsub.s32 32, %v1809_v29  ;;  %v1814_v45 = vsub.s32 4294967266, %v1809_v29  ;;  %v1811_v18 = vshll.u32 %v1802_v27, %v1809_v29  ;;  %v686_v49 = vmul.u32 %v684_v56, %v659_v59 }
 0x137   :  { %v687_v6 = vmul.u32 %v683_v16, %v660_v62  ;;  %v646_v27 = vsel %vm642_vm2, %v626_v9, %v629_v37  ;;  %v647_v21 = vsel %vm645_vm3, %v635_v40, 2102212464  ;;  %v685_v38 = vmul.u32 %v683_v16, %v659_v59 }
 0x138   :  { %v1812_v8 = vshrl.u32 %v1794_v50, %v1810_v42  ;;  %v1815_v12 = vadd.s32 127, %v1814_v45  ;;  %v689_v5 = vshll.u32 %v686_v49, 16  ;;  %vm3016_vm9 = vcmp.le.f32.partialorder %v1700_v24, 0.7853982 }
 0x139   :  { %v664_v39 = vmul.u32 %v662_v60, %v659_v59  ;;  %v688_v50 = vmul.u32 %v684_v56, %v660_v62  ;;  %v1864_v20 = vadd.s32 1, %v2307_v4  ;;  %v665_v43 = vmul.u32 %v661_v35, %v660_v62 }
 0x13a   :  { %v1813_v48 = vor.u32 %v1812_v8, %v1811_v18  ;;  %v1816_v10 = vshll.u32 %v1815_v12, 23  ;;  %v691_v36 = vshll.u32 %v687_v6, 16  ;;  %vm693_vm10 = vc.u32 %v685_v38, %v689_v5 }
 0x13b   :  { %v663_v44 = vmul.u32 %v661_v35, %v659_v59  ;;  %v667_v41 = vshll.u32 %v664_v39, 16  ;;  %v694_v40 = vsel %vm693_vm10, 1, %v2383_v31  ;;  %v666_v22 = vmul.u32 %v662_v60, %v660_v62 }
 0x13c   :  { %v1817_v53 = vor.u32 4788187, %v1816_v10  ;;  %v1820_v33 = vcvt.s32.f32 %v1813_v48  ;;  %v669_v46 = vshll.u32 %v665_v43, 16  ;;  %v695_v57 = vadd.s32 %v689_v5, %v685_v38 }
 0x13d   :  { %v696_v24 = vadd.s32 %v694_v40, %v688_v50  ;;  %vm671_vm11 = vc.u32 %v663_v44, %v667_v41  ;;  %v673_v55 = vadd.s32 %v667_v41, %v663_v44  ;;  %vm1865_vm12 = vcmp.gt.s32.totalorder %v1864_v20, 0 }
 0x13e   :  { %v1818_v37 = vand.u32 2147483647, %v1817_v53  ;;  %v648_v47 = vsel %vm644_vm5, %v2964_v52, %v647_v21  ;;  %v672_v23 = vsel %vm671_vm11, 1, %v2383_v31  ;;  %vm697_vm13 = vc.u32 %v695_v57, %v691_v36 }
 0x13f   :  { %v1866_v29 = vsel %vm1865_vm12, %v1864_v20, 0  ;;  %v674_v2 = vadd.s32 %v672_v23, %v666_v22  ;;  %vm675_vm14 = vc.u32 %v673_v55, %v669_v46  ;;  %v698_v62 = vsel %vm697_vm13, 1, %v2383_v31 }
 0x140   :  { %v1821_v34 = vmul.f32 %v1820_v33, %v1818_v37  ;;  %v676_v42 = vsel %vm675_vm14, 1, %v2383_v31  ;;  %v690_v45 = vshrl.u32 %v686_v49, 16  ;;  %v700_v54 = vadd.s32 %v698_v62, %v696_v24 }
 0x141   :  { %v1868_v51 = vand.u32 31, %v1866_v29  ;;  %v649_v52 = vsel %vm643_vm7, %v646_v27, %v648_v47  ;;  %v668_v16 = vshrl.u32 %v664_v39, 16  ;;  %v678_v56 = vadd.s32 %v676_v42, %v674_v2 }
 0x142   :  { %v1822_v59 = vxor.u32 2147483648, %v1821_v34  ;;  %v692_v18 = vshrl.u32 %v687_v6, 16  ;;  %v701_v8 = vadd.s32 %v700_v54, %v690_v45  ;;  %v670_v12 = vshrl.u32 %v665_v43, 16 }
 0x143   :  { %v679_v25 = vadd.s32 %v678_v56, %v668_v16  ;;  %v3036_v9 = vsub.s32 32, %v1868_v51  ;;  %v703_v30 = vmul.u32 %v2955_v61, %v649_v52  ;;  %v1854_v48 = vand.u32 2147483647, %v2947_v58 }
 0x144   :  { %v1823_v1 = vsel %vm1702_vm8, %v1822_v59, %v1821_v34  ;;  %v702_v49 = vadd.s32 %v701_v8, %v692_v18  ;;  %v3046_v35 = vadd.s32 %v695_v57, %v691_v36  ;;  %v3048_v60 = vshrl.u32 %v1866_v29, 5 }
 0x145   :  { %v3034_v4 = vsel %vm3016_vm9, %v2642_v7, %v1823_v1  ;;  %v3044_v10 = vadd.s32 %v679_v25, %v670_v12  ;;  %v1871_v6 = vshll.u32 %v2377_v11, %v1868_v51  ;;  %v1874_v21 = vshll.u32 %v2378_v13, %v1868_v51 }
 0x146   :  { %v3040_v0 = vmul.f32 %v3034_v4, %v3034_v4  ;;  %v706_v27 = vadd.s32 1, %v702_v49  ;;  %v1877_v38 = vshll.u32 %v2379_v15, %v1868_v51  ;;  %v1880_v5 = vshll.u32 %v2380_v17, %v1868_v51 }
 0x147   :  { %vm705_vm15 = vc.u32 %v3044_v10, %v3046_v35  ;;  %v1872_v61 = vshrl.u32 %v2378_v13, %v3036_v9  ;;  %v1875_v53 = vshrl.u32 %v2379_v15, %v3036_v9  ;;  %v1878_v39 = vshrl.u32 %v2380_v17, %v3036_v9 }
 0x148   :  { %v1829_v50 = vmul.f32 -0.001358992, %v3040_v0  ;;  %v707_v20 = vsel %vm705_vm15, %v706_v27, %v702_v49  ;;  %v1881_v33 = vshrl.u32 %v2381_v19, %v3036_v9  ;;  %v1883_v43 = vshll.u32 %v2381_v19, %v1868_v51 }
 0x149   :  { %v1836_v36 = vmul.f32 -0.00019511016, %v3040_v0  ;;  %v708_v37 = vadd.s32 %v707_v20, %v703_v30  ;;  %v1861_v44 = vand.u32 8388607, %v1854_v48  ;;  %v1884_v41 = vshrl.u32 %v2382_v28, %v3036_v9 }
 0x14a   :  { %v1882_v40 = vor.u32 %v1881_v33, %v1880_v5  ;;  %v3071_v46 = vor.u32 %v1875_v53, %v1874_v21  ;;  %v3073_v57 = vor.u32 %v1878_v39, %v1877_v38  ;;  %v1830_v34 = vadd.f32 0.041655596, %v1829_v50 }
 0x14b   :  { %v709_v22 = vadd.s32 536870912, %v708_v37  ;;  %v1885_v24 = vor.u32 %v1884_v41, %v1883_v43  ;;  %v3075_v55 = vor.u32 %v1872_v61, %v1871_v6  ;;  %vm1886_vm0 = vcmp.lt.s32.totalorder %v3048_v60, 1 }
 0x14c   :  { %vm1889_vm1 = vcmp.lt.s32.totalorder %v3048_v60, 4  ;;  %v1837_v47 = vadd.f32 0.008332121, %v1836_v36  ;;  %v1862_v29 = vor.u32 8388608, %v1861_v44  ;;  %vm1888_vm2 = vcmp.lt.s32.totalorder %v3048_v60, 3 }
 0x14d   :  { %v3079_v23 = vshrl.u32 %v709_v22, 30  ;;  %v1895_v59 = vsel %vm1889_vm1, %v1882_v40, 920167782  ;;  %v1899_v2 = vsel %vm1889_vm1, %v1885_v24, 1326507024  ;;  %v1824_v62 = vsub.s32 4, %v2943_v14 }
 0x14e   :  { %v1898_v45 = vsel %vm1886_vm0, %v3071_v46, %v3073_v57  ;;  %v1831_v54 = vmul.f32 %v1830_v34, %v3040_v0  ;;  %v1894_v51 = vsel %vm1886_vm0, %v3075_v55, %v3071_v46  ;;  %v1896_v1 = vsel %vm1888_vm2, %v3073_v57, %v1895_v59 }
 0x14f   :  { %v711_v42 = vshll.u32 %v3079_v23, 30  ;;  %v1900_v52 = vsel %vm1888_vm2, %v1882_v40, %v1899_v2  ;;  %v1838_v16 = vmul.f32 %v1837_v47, %v3040_v0  ;;  %vm1887_vm3 = vcmp.lt.s32.totalorder %v3048_v60, 2 }
 0x150   :  { %v3104_v18 = vshll.u32 %v1862_v29, 8  ;;  %v1901_v8 = vsel %vm1887_vm3, %v1898_v45, %v1900_v52  ;;  %v1897_v25 = vsel %vm1887_vm3, %v1894_v51, %v1896_v1  ;;  %v3113_v49 = vsel %vm1702_vm8, %v1824_v62, %v2943_v14 }
 0x151   :  { %v712_v56 = vsub.s32 %v708_v37, %v711_v42  ;;  %v1832_v30 = vadd.f32 -0.4999988, %v1831_v54  ;;  %v1905_v6 = vand.u32 65535, %v1901_v8  ;;  %v1906_v27 = vshrl.u32 %v1901_v8, 16 }
 0x152   :  { %v1839_v21 = vadd.f32 -0.16666654, %v1838_v16  ;;  %v1903_v5 = vand.u32 65535, %v3104_v18  ;;  %v1904_v61 = vshrl.u32 %v3104_v18, 16  ;;  %v1928_v39 = vshrl.u32 %v1897_v25, 16 }
 0x153   :  { %vm713_vm4 = vcmp.lt.s32.totalorder %v712_v56, 0  ;;  %v714_v12 = vsub.s32 0, %v712_v56  ;;  %v1827_v50 = vsel %vm3016_vm9, 0, %v3113_v49  ;;  %v1927_v43 = vand.u32 65535, %v1897_v25 }
 0x154   :  { %v1908_v20 = vmul.u32 %v1906_v27, %v1903_v5  ;;  %v1909_v33 = vmul.u32 %v1905_v6, %v1904_v61  ;;  %v1833_v14 = vmul.f32 %v1832_v30, %v3040_v0  ;;  %v704_v36 = vadd.s32 %v3046_v35, %v3044_v10 }
 0x155   :  { %v715_v38 = vsel %vm713_vm4, %v714_v12, %v712_v56  ;;  %v1870_v44 = vshrl.u32 %v2377_v11, %v3036_v9  ;;  %v1840_v41 = vmul.f32 %v1839_v21, %v3040_v0  ;;  %v1907_v40 = vmul.u32 %v1905_v6, %v1903_v5 }
 0x156   :  { %v716_v53 = vclz %v715_v38  ;;  %v1910_v22 = vmul.u32 %v1906_v27, %v1904_v61  ;;  %v1911_v24 = vshll.u32 %v1908_v20, 16  ;;  %v1912_v34 = vshrl.u32 %v1908_v20, 16 }
 0x157   :  { %v1913_v47 = vshll.u32 %v1909_v33, 16  ;;  %v1930_v29 = vmul.u32 %v1928_v39, %v1903_v5  ;;  %v1931_v62 = vmul.u32 %v1927_v43, %v1904_v61  ;;  %v1929_v35 = vmul.u32 %v1927_v43, %v1903_v5 }
 0x158   :  { %v2284_v37 = vadd.s32 4294967294, %v716_v53  ;;  %vm1915_vm7 = vc.u32 %v1907_v40, %v1911_v24  ;;  %v1917_v2 = vadd.s32 %v1911_v24, %v1907_v40  ;;  %v1932_v9 = vmul.u32 %v1928_v39, %v1904_v61 }
 0x159   :  { %v1916_v10 = vsel %vm1915_vm7, 1, %v2383_v31  ;;  %v1933_v0 = vshll.u32 %v1930_v29, 16  ;;  %v1935_v12 = vshll.u32 %v1931_v62, 16  ;;  %v1891_v27 = vsel %vm1889_vm1, %v3073_v57, 2102212464 }
 0x15a   :  { %vm2285_vm5 = vcmp.lt.s32.totalorder %v2284_v37, 0  ;;  %v1918_v54 = vadd.s32 %v1916_v10, %v1910_v22  ;;  %vm1919_vm8 = vc.u32 %v1917_v2, %v1913_v47  ;;  %v1841_v38 = vadd.f32 1.0, %v1840_v41 }
 0x15b   :  { %v719_v59 = vsel %vm2285_vm5, 0, %v2284_v37  ;;  %v1920_v16 = vsel %vm1919_vm8, 1, %v2383_v31  ;;  %vm1937_vm10 = vc.u32 %v1929_v35, %v1933_v0  ;;  %v1939_v25 = vadd.s32 %v1933_v0, %v1929_v35 }
 0x15c   :  { %v720_v42 = vsub.s32 32, %v719_v59  ;;  %v724_v45 = vsub.s32 4294967266, %v719_v59  ;;  %v721_v51 = vshll.u32 %v712_v56, %v719_v59  ;;  %v1922_v8 = vadd.s32 %v1920_v16, %v1918_v54  ;;  %v3132_v56 = vpop.f32.mrf.mxu2 }
 0x15d   :  { %v1938_v21 = vsel %vm1937_vm10, 1, %v2383_v31  ;;  %vm1941_vm11 = vc.u32 %v1939_v25, %v1935_v12  ;;  %v1890_v39 = vsel %vm1886_vm0, %v1870_v44, %v3075_v55  ;;  %v1914_v20 = vshrl.u32 %v1909_v33, 16 }
 0x15e   :  { %v722_v1 = vshrl.u32 %v704_v36, %v720_v42  ;;  %v725_v52 = vadd.s32 127, %v724_v45  ;;  %v1923_v5 = vadd.s32 %v1922_v8, %v1912_v34  ;;  %v1940_v61 = vadd.s32 %v1938_v21, %v1932_v9 }
 0x15f   :  { %v1942_v43 = vsel %vm1941_vm11, 1, %v2383_v31  ;;  %v734_v36 = vsub.s32 4, %v3079_v23  ;;  %v1892_v57 = vsel %vm1888_vm2, %v3071_v46, %v1891_v27  ;;  %v1934_v37 = vshrl.u32 %v1930_v29, 16 }
 0x160   :  { %v723_v30 = vor.u32 %v722_v1, %v721_v51  ;;  %v726_v6 = vshll.u32 %v725_v52, 23  ;;  %v1944_v41 = vadd.s32 %v1942_v43, %v1940_v61  ;;  %v3142_v24 = vadd.s32 %v1923_v5, %v1914_v20 }
 0x161   :  { %v2011_v34 = vand.u32 2139095040, %v3132_v56  ;;  %v1834_v47 = vadd.f32 1.0, %v1833_v14  ;;  %v1842_v55 = vmul.f32 %v1841_v38, %v3034_v4  ;;  %v1936_v33 = vshrl.u32 %v1931_v62, 16  ;;  %v3160_v62 = vpop.f32.mrf.mxu3 }
 0x162   :  { %v727_v53 = vor.u32 4788187, %v726_v6  ;;  %v730_v22 = vcvt.s32.f32 %v723_v30  ;;  %v1945_v44 = vadd.s32 %v1944_v41, %v1934_v37  ;;  %vm612_vm12 = vcmp.lt.s32.totalorder %v2824_v3, 0 }
 0x163   :  { %v3147_v2 = vadd.s32 %v1939_v25, %v1935_v12  ;;  %v2012_v42 = vshrl.u32 %v2011_v34, 23  ;;  %v735_v46 = vsel %vm612_vm12, %v734_v36, %v3079_v23  ;;  %v1893_v29 = vsel %vm1887_vm3, %v1890_v39, %v1892_v57 }
 0x164   :  { %v728_v40 = vand.u32 2147483647, %v727_v53  ;;  %v1946_v45 = vadd.s32 %v1945_v44, %v1936_v33  ;;  %v1844_v4 = vand.u32 3, %v1827_v50  ;;  %v1847_v35 = vxor.u32 2147483648, %v1842_v55 }
 0x165   :  { %vm1949_vm13 = vc.u32 %v3142_v24, %v3147_v2  ;;  %v2310_v10 = vadd.s32 4294967169, %v2012_v42  ;;  %v1850_v54 = vxor.u32 2147483648, %v1834_v47  ;;  %vm3164_vm14 = vcmp.le.f32.partialorder %v610_v32, 0.7853982 }
 0x166   :  { %v731_v59 = vmul.f32 %v730_v22, %v728_v40  ;;  %v1950_v23 = vadd.s32 1, %v1946_v45  ;;  %v737_v49 = vsel %vm3164_vm14, 0, %v735_v46  ;;  %v1947_v50 = vmul.u32 %v3104_v18, %v1893_v29 }
 0x167   :  { %v2018_v9 = vadd.s32 1, %v2310_v10  ;;  %v2171_v32 = vrot.slane %v3160_v62, 6  ;;  %v2008_v1 = vand.u32 2147483647, %v3132_v56  ;;  %vm1846_vm9 = vcmp.eq.s32.totalorder %v1844_v4, 0 }
 0x168   :  { %v732_v14 = vxor.u32 2147483648, %v731_v59  ;;  %v1951_v51 = vsel %vm1949_vm13, %v1950_v23, %v1946_v45  ;;  %vm1845_vm0 = vcmp.lt.s32.totalorder %v1844_v4, 2  ;;  %v1848_v8 = vsel %vm1846_vm9, %v1834_v47, %v1847_v35 }
 0x169   :  { %v1952_v16 = vadd.s32 %v1951_v51, %v1947_v50  ;;  %vm2019_vm15 = vcmp.gt.s32.totalorder %v2018_v9, 0  ;;  %v754_v12 = vadd.s32 3, %v737_v49  ;;  %vm1849_vm1 = vcmp.eq.s32.totalorder %v1844_v4, 2 }
 0x16a   :  { %v733_v63 = vsel %vm612_vm12, %v732_v14, %v731_v59  ;;  %v2020_v25 = vsel %vm2019_vm15, %v2018_v9, 0  ;;  %v1851_v27 = vsel %vm1849_vm1, %v1850_v54, %v1842_v55  ;;  %v2177_v21 = vmul.f32 %v2171_v32, %v2642_v7 }
 0x16b   :  { %v736_v0 = vsel %vm3164_vm14, %v2824_v3, %v733_v63  ;;  %v1953_v6 = vadd.s32 536870912, %v1952_v16  ;;  %v2015_v38 = vand.u32 8388607, %v2008_v1  ;;  %v2022_v5 = vand.u32 31, %v2020_v25 }
 0x16c   :  { %v738_v52 = vmul.f32 %v736_v0, %v736_v0  ;;  %v1852_v61 = vsel %vm1845_vm0, %v1848_v8, %v1851_v27  ;;  %v755_v43 = vand.u32 3, %v754_v12  ;;  %vm1843_vm2 = vweird.f32 %v2642_v7 }
 0x16d   :  { %v3183_v20 = vshrl.u32 %v1953_v6, 30  ;;  %v3185_v36 = vsub.s32 32, %v2022_v5  ;;  %v3189_v40 = vsel %vm1843_vm2, nan, %v1852_v61  ;;  %2339 = vtanh.f32 %v2177_v21 }
 0x16e   :  { %v739_v18 = vmul.f32 -0.001358992, %v738_v52  ;;  %v746_v30 = vmul.f32 -0.00019511016, %v738_v52  ;;  %v2016_v22 = vor.u32 8388608, %v2015_v38  ;;  %v3193_v33 = vshrl.u32 %v2020_v25, 5 }
 0x16f   :  { %v1955_v41 = vshll.u32 %v3183_v20, 30  ;;  %vm757_vm3 = vcmp.eq.s32.totalorder %v755_v43, 0  ;;  %vm760_vm4 = vcmp.eq.s32.totalorder %v755_v43, 2  ;;  %v2025_v44 = vshll.u32 %v2377_v11, %v2022_v5 }
 0x170   :  { %v740_v53 = vadd.f32 0.041655596, %v739_v18  ;;  %v747_v39 = vadd.f32 0.008332121, %v746_v30  ;;  %v2026_v7 = vshrl.u32 %v2378_v13, %v3185_v36  ;;  %v2029_v59 = vshrl.u32 %v2379_v15, %v3185_v36 }
 0x171   :  { %v3191_v55 = vsub.s32 %v1952_v16, %v1955_v41  ;;  %v2032_v42 = vshrl.u32 %v2380_v17, %v3185_v36  ;;  %vm756_vm5 = vcmp.lt.s32.totalorder %v755_v43, 2  ;;  %vm753_vm8 = vweird.f32 %v2824_v3 }
 0x172   :  { %v741_v57 = vmul.f32 %v740_v53, %v738_v52  ;;  %v748_v37 = vmul.f32 %v747_v39, %v738_v52  ;;  %v2028_v4 = vshll.u32 %v2378_v13, %v2022_v5  ;;  %v2031_v14 = vshll.u32 %v2379_v15, %v2022_v5 }
 0x173   :  { %vm1957_vm7 = vcmp.lt.s32.totalorder %v3191_v55, 0  ;;  %v1958_v45 = vsub.s32 0, %v3191_v55  ;;  %v2034_v10 = vshll.u32 %v2380_v17, %v2022_v5  ;;  %v2035_v35 = vshrl.u32 %v2381_v19, %v3185_v36  ;;  %v2340_v49 = vpop.eup %2339 }
 0x174   :  { %v742_v34 = vadd.f32 -0.4999988, %v741_v57  ;;  %v749_v47 = vadd.f32 -0.16666654, %v748_v37  ;;  %v2038_v63 = vshrl.u32 %v2382_v28, %v3185_v36  ;;  %v3213_v9 = vor.u32 %v2026_v7, %v2025_v44 }
 0x175   :  { %v1959_v23 = vsel %vm1957_vm7, %v1958_v45, %v3191_v55  ;;  %v3215_v51 = vor.u32 %v2029_v59, %v2028_v4  ;;  %v3217_v13 = vor.u32 %v2032_v42, %v2031_v14  ;;  %v2037_v16 = vshll.u32 %v2381_v19, %v2022_v5 }
 0x176   :  { %v743_v46 = vmul.f32 %v742_v34, %v738_v52  ;;  %v750_v29 = vmul.f32 %v749_v47, %v738_v52  ;;  %v1960_v50 = vclz %v1959_v23  ;;  %v2036_v52 = vor.u32 %v2035_v35, %v2034_v10 }
 0x177   :  { %v1948_v8 = vadd.s32 %v3147_v2, %v3142_v24  ;;  %vm2040_vm10 = vcmp.lt.s32.totalorder %v3193_v33, 1  ;;  %v3223_v28 = vshll.u32 %v2016_v22, 8  ;;  %v2039_v18 = vor.u32 %v2038_v63, %v2037_v16 }
 0x178   :  { %v744_v54 = vadd.f32 1.0, %v743_v46  ;;  %v751_v60 = vadd.f32 1.0, %v750_v29  ;;  %v2308_v12 = vadd.s32 4294967294, %v1960_v50  ;;  %vm2041_vm11 = vcmp.lt.s32.totalorder %v3193_v33, 2 }
 0x179   :  { %vm2043_vm12 = vcmp.lt.s32.totalorder %v3193_v33, 4  ;;  %vm2042_vm14 = vcmp.lt.s32.totalorder %v3193_v33, 3  ;;  %v2048_v19 = vsel %vm2040_vm10, %v3213_v9, %v3215_v51  ;;  %v2052_v39 = vsel %vm2040_vm10, %v3215_v51, %v3217_v13 }
 0x17a   :  { %v752_v15 = vmul.f32 %v751_v60, %v736_v0  ;;  %v761_v17 = vxor.u32 2147483648, %v744_v54  ;;  %vm2309_vm13 = vcmp.lt.s32.totalorder %v2308_v12, 0  ;;  %v2049_v24 = vsel %vm2043_vm12, %v2036_v52, 920167782 }
 0x17b   :  { %v1963_v30 = vsel %vm2309_vm13, 0, %v2308_v12  ;;  %v2050_v6 = vsel %vm2042_vm14, %v3217_v13, %v2049_v24  ;;  %v2053_v57 = vsel %vm2043_vm12, %v2039_v18, 1326507024  ;;  %v2057_v47 = vand.u32 65535, %v3223_v28 }
 0x17c   :  { %v758_v25 = vxor.u32 2147483648, %v752_v15  ;;  %v762_v0 = vsel %vm760_vm4, %v761_v17, %v752_v15  ;;  %v1964_v21 = vsub.s32 32, %v1963_v30  ;;  %v1965_v38 = vshll.u32 %v3191_v55, %v1963_v30 }
 0x17d   :  { %v1968_v5 = vsub.s32 4294967266, %v1963_v30  ;;  %v2051_v53 = vsel %vm2041_vm11, %v2048_v19, %v2050_v6  ;;  %v2054_v22 = vsel %vm2042_vm14, %v2036_v52, %v2053_v57  ;;  %v2180_v26 = vmul.f32 %v2171_v32, %v3160_v62 }
 0x17e   :  { %v759_v2 = vsel %vm757_vm3, %v744_v54, %v758_v25  ;;  %v1966_v37 = vshrl.u32 %v1948_v8, %v1964_v21  ;;  %v2055_v34 = vsel %vm2041_vm11, %v2052_v39, %v2054_v22  ;;  %v2081_v55 = vand.u32 65535, %v2051_v53 }
 0x17f   :  { %v763_v27 = vsel %vm756_vm5, %v759_v2, %v762_v0  ;;  %v1969_v41 = vadd.s32 127, %v1968_v5  ;;  %v2082_v44 = vshrl.u32 %v2051_v53, 16  ;;  %v2058_v42 = vshrl.u32 %v3223_v28, 16 }
 0x180   :  { %v764_v61 = vsel %vm753_vm8, nan, %v763_v27  ;;  %v1967_v7 = vor.u32 %v1966_v37, %v1965_v38  ;;  %v2059_v46 = vand.u32 65535, %v2055_v34  ;;  %v2060_v29 = vshrl.u32 %v2055_v34, 16 }
 0x181   :  { %v1232_v43 = vsel %vm298_vm6, %v764_v61, %v2824_v3  ;;  %v1970_v59 = vshll.u32 %v1969_v41, 23  ;;  %vm2189_vm6 = vcmask 1043456   ;;  %vm3267_vm9 = vcmp.le.f32.partialorder %v1854_v48, 0.7853982 }
 0x182   :  { %2195 = vst [vmem:[#allocation2 + $0x10] sm:$0xff] %v1232_v43  ;;  %v2190_v3 = vsel %vm2189_vm6, %v3189_v40, %v2340_v49  ;;  %2341 = vtanh.f32 %v2180_v26  ;;  %v2084_v14 = vmul.u32 %v2082_v44, %v2057_v47  ;;  %vm1856_vm15 = vcmp.lt.s32.totalorder %v2947_v58, 0 }
 0x183   :  { %v1971_v4 = vor.u32 4788187, %v1970_v59  ;;  %2196 = vst [vmem:[#allocation2 + $0x18] sm:$0xff] %v2190_v3  ;;  %v2024_v62 = vshrl.u32 %v2377_v11, %v3185_v36  ;;  %v2062_v32 = vmul.u32 %v2060_v29, %v2057_v47  ;;  %v2063_v40 = vmul.u32 %v2059_v46, %v2058_v42 }
 0x184   :  { %v1974_v35 = vcvt.s32.f32 %v1967_v7  ;;  %v2085_v54 = vmul.u32 %v2081_v55, %v2058_v42  ;;  %v2087_v60 = vshll.u32 %v2084_v14, 16  ;;  %v2061_v23 = vmul.u32 %v2059_v46, %v2057_v47 }
 0x185   :  { %v1972_v10 = vand.u32 2147483647, %v1971_v4  ;;  %v2064_v48 = vmul.u32 %v2060_v29, %v2058_v42  ;;  %v2065_v63 = vshll.u32 %v2062_v32, 16  ;;  %v2083_v49 = vmul.u32 %v2081_v55, %v2057_v47 }
 0x186   :  { %v2067_v15 = vshll.u32 %v2063_v40, 16  ;;  %v2086_v17 = vmul.u32 %v2082_v44, %v2058_v42  ;;  %v2089_v52 = vshll.u32 %v2085_v54, 16  ;;  %v2045_v36 = vsel %vm2043_vm12, %v3217_v13, 2102212464 }
 0x187   :  { %v1975_v50 = vmul.f32 %v1974_v35, %v1972_v10  ;;  %vm2069_vm0 = vc.u32 %v2061_v23, %v2065_v63  ;;  %v2071_v16 = vadd.s32 %v2065_v63, %v2061_v23  ;;  %vm2091_vm1 = vc.u32 %v2083_v49, %v2087_v60 }
 0x188   :  { %v2093_v8 = vadd.s32 %v2087_v60, %v2083_v49  ;;  %v2342_v12 = vpop.eup %2341  ;;  %v2070_v25 = vsel %vm2069_vm0, 1, %v2383_v31  ;;  %v2092_v18 = vsel %vm2091_vm1, 1, %v2383_v31  ;;  %v2066_v0 = vshrl.u32 %v2062_v32, 16 }
 0x189   :  { %v1976_v11 = vxor.u32 2147483648, %v1975_v50  ;;  %2199 = vst [vmem:[#allocation2 + $0x30] sm:$0x3] %v2342_v12  ;;  %v2072_v19 = vadd.s32 %v2070_v25, %v2064_v48  ;;  %vm2073_vm2 = vc.u32 %v2071_v16, %v2067_v15  ;;  %v2094_v24 = vadd.s32 %v2092_v18, %v2086_v17  ;;  %v292_v17 = vpop.f32.mrf.mxu2 }
 0x18a   :  { %vm2095_vm3 = vc.u32 %v2093_v8, %v2089_v52  ;;  %v2074_v30 = vsel %vm2073_vm2, 1, %v2383_v31  ;;  %v2088_v21 = vshrl.u32 %v2084_v14, 16  ;;  %v2044_v61 = vsel %vm2040_vm10, %v2024_v62, %v3213_v9  ;;  %v266_v14 = vpop.f32.mrf.mxu1 }
 0x18b   :  { %v1977_v2 = vsel %vm1856_vm15, %v1976_v11, %v1975_v50  ;;  %v2096_v6 = vsel %vm2095_vm3, 1, %v2383_v31  ;;  %v2076_v27 = vadd.s32 %v2074_v30, %v2072_v19  ;;  %v2046_v53 = vsel %vm2042_vm14, %v3215_v51, %v2045_v36 }
 0x18c   :  { %v1980_v13 = vsel %vm3267_vm9, %v2947_v58, %v1977_v2  ;;  %v2098_v38 = vadd.s32 %v2096_v6, %v2094_v24  ;;  %v2068_v39 = vshrl.u32 %v2063_v40, 16  ;;  %v2090_v43 = vshrl.u32 %v2085_v54, 16 }
 0x18d   :  { %v1982_v5 = vmul.f32 %v1980_v13, %v1980_v13  ;;  %v2077_v57 = vadd.s32 %v2076_v27, %v2066_v0  ;;  %v1978_v37 = vsub.s32 4, %v3183_v20  ;;  %v2047_v34 = vsel %vm2041_vm11, %v2044_v61, %v2046_v53 }
 0x18e   :  { %v2099_v31 = vadd.s32 %v2098_v38, %v2088_v21  ;;  %v2097_v55 = vadd.s32 %v2093_v8, %v2089_v52  ;;  %v2101_v3 = vmul.u32 %v3223_v28, %v2047_v34  ;;  %v2172_v28 = vrot.slane %v266_v14, 6 }
 0x18f   :  { %v1983_v41 = vmul.f32 -0.001358992, %v1982_v5  ;;  %v1990_v22 = vmul.f32 -0.00019511016, %v1982_v5  ;;  %v2078_v47 = vadd.s32 %v2077_v57, %v2068_v39  ;;  %v1979_v42 = vsel %vm1856_vm15, %v1978_v37, %v3183_v20 }
 0x190   :  { %v2100_v44 = vadd.s32 %v2099_v31, %v2090_v43  ;;  %v1981_v62 = vsel %vm3267_vm9, 0, %v1979_v42  ;;  %v2178_v15 = vmul.f32 %v2172_v28, %v2947_v58  ;;  %v2173_v16 = vrot.slane %v292_v17, 6 }
 0x191   :  { %v1984_v7 = vadd.f32 0.041655596, %v1983_v41  ;;  %v1991_v9 = vadd.f32 0.008332121, %v1990_v22  ;;  %vm2103_vm4 = vc.u32 %v2078_v47, %v2097_v55  ;;  %v1998_v23 = vand.u32 3, %v1981_v62 }
 0x192   :  { %v2104_v59 = vadd.s32 1, %v2100_v44  ;;  %2343 = vtanh.f32 %v2178_v15  ;;  %v2181_v25 = vmul.f32 %v2172_v28, %v266_v14  ;;  %v2182_v18 = vmul.f32 %v2173_v16, %v292_v17 }
 0x193   :  { %v1985_v26 = vmul.f32 %v1984_v7, %v1982_v5  ;;  %v1992_v51 = vmul.f32 %v1991_v9, %v1982_v5  ;;  %vm2000_vm5 = vcmp.eq.s32.totalorder %v1998_v23, 0  ;;  %vm2003_vm8 = vcmp.eq.s32.totalorder %v1998_v23, 2 }
 0x194   :  { %v2105_v46 = vsel %vm2103_vm4, %v2104_v59, %v2100_v44  ;;  %vm1999_vm10 = vcmp.lt.s32.totalorder %v1998_v23, 2  ;;  %vm1997_vm11 = vweird.f32 %v2947_v58  ;;  %2345 = vtanh.f32 %v2181_v25 }
 0x195   :  { %v1986_v29 = vadd.f32 -0.4999988, %v1985_v26  ;;  %v1993_v4 = vadd.f32 -0.16666654, %v1992_v51  ;;  %v2106_v33 = vadd.s32 %v2105_v46, %v2101_v3  ;;  %2347 = vtanh.f32 %v2182_v18 }
 0x196   :  { %v2102_v30 = vadd.s32 %v2097_v55, %v2078_v47  ;;  %vm2010_vm13 = vcmp.lt.s32.totalorder %v3132_v56, 0  ;;  %vm3310_vm14 = vcmp.le.f32.partialorder %v2008_v1, 0.7853982  ;;  %v2179_v14 = vmul.f32 %v2173_v16, %v3132_v56 }
 0x197   :  { %v1987_v32 = vmul.f32 %v1986_v29, %v1982_v5  ;;  %v1994_v40 = vmul.f32 %v1993_v4, %v1982_v5  ;;  %v2107_v10 = vadd.s32 536870912, %v2106_v33  ;;  %vm2151_vm1 = vweird.f32 %v3132_v56 }
 0x198   :  { %v2344_v2 = vpop.eup %2343  ;;  %2349 = vtanh.f32 %v2179_v14 }
 0x199   :  { %v1988_v35 = vadd.f32 1.0, %v1987_v32  ;;  %v1995_v54 = vadd.f32 1.0, %v1994_v40  ;;  %v3301_v60 = vshrl.u32 %v2107_v10, 30 }
 0x19a   :  { %v2346_v61 = vpop.eup %2345 }
 0x19b   :  { %v1996_v48 = vmul.f32 %v1995_v54, %v1980_v13  ;;  %v2109_v20 = vshll.u32 %v3301_v60, 30  ;;  %v2004_v49 = vxor.u32 2147483648, %v1988_v35  ;;  %v2348_v53 = vpop.eup %2347  ;;  %2200 = vst [vmem:[#allocation2 + $0x38] sm:$0x3] %v2346_v61  ;;  %v2132_v9 = vsub.s32 4, %v3301_v60 }
 0x19c   :  { %2201 = vst [vmem:[#allocation2 + $0x40] sm:$0x3] %v2348_v53 }
 0x19d   :  { %v2001_v63 = vxor.u32 2147483648, %v1996_v48  ;;  %v2110_v50 = vsub.s32 %v2106_v33, %v2109_v20  ;;  %v2005_v8 = vsel %vm2003_vm8, %v2004_v49, %v1996_v48  ;;  %v2133_v42 = vsel %vm2010_vm13, %v2132_v9, %v3301_v60 }
 0x19e   :  { %v2135_v29 = vsel %vm3310_vm14, 0, %v2133_v42  ;;  %v2350_v48 = vpop.eup %2349 }
 0x19f   :  { %v2002_v45 = vsel %vm2000_vm5, %v1988_v35, %v2001_v63  ;;  %vm2111_vm7 = vcmp.lt.s32.totalorder %v2110_v50, 0  ;;  %v2112_v52 = vsub.s32 0, %v2110_v50  ;;  %v2152_v40 = vand.u32 3, %v2135_v29 }
 0x1a0   :  { %v2006_v11 = vsel %vm1999_vm10, %v2002_v45, %v2005_v8 }
 0x1a1   :  { %v2113_v12 = vsel %vm2111_vm7, %v2112_v52, %v2110_v50  ;;  %v2007_v24 = vsel %vm1997_vm11, nan, %v2006_v11  ;;  %vm2154_vm9 = vcmp.eq.s32.totalorder %v2152_v40, 0  ;;  %vm2157_vm15 = vcmp.eq.s32.totalorder %v2152_v40, 2 }
 0x1a2   :  { %v2114_v36 = vclz %v2113_v12  ;;  %v2191_v27 = vsel %vm2189_vm6, %v2007_v24, %v2344_v2  ;;  %vm2153_vm0 = vcmp.lt.s32.totalorder %v2152_v40, 2 }
 0x1a3   :  { %2197 = vst [vmem:[#allocation2 + $0x20] sm:$0xff] %v2191_v27 }
 0x1a4   :  { %v2311_v19 = vadd.s32 4294967294, %v2114_v36 }
 0x1a6   :  { %vm2312_vm12 = vcmp.lt.s32.totalorder %v2311_v19, 0 }
 0x1a7   :  { %v2117_v0 = vsel %vm2312_vm12, 0, %v2311_v19 }
 0x1a8   :  { %v2118_v6 = vsub.s32 32, %v2117_v0  ;;  %v2122_v13 = vsub.s32 4294967266, %v2117_v0  ;;  %v2119_v21 = vshll.u32 %v2110_v50, %v2117_v0 }
 0x1aa   :  { %v2120_v38 = vshrl.u32 %v2102_v30, %v2118_v6  ;;  %v2123_v5 = vadd.s32 127, %v2122_v13 }
 0x1ac   :  { %v2121_v39 = vor.u32 %v2120_v38, %v2119_v21  ;;  %v2124_v58 = vshll.u32 %v2123_v5, 23 }
 0x1ae   :  { %v2125_v57 = vor.u32 4788187, %v2124_v58  ;;  %v2128_v31 = vcvt.s32.f32 %v2121_v39 }
 0x1b0   :  { %v2126_v43 = vand.u32 2147483647, %v2125_v57 }
 0x1b2   :  { %v2129_v37 = vmul.f32 %v2128_v31, %v2126_v43 }
 0x1b4   :  { %v2130_v41 = vxor.u32 2147483648, %v2129_v37 }
 0x1b6   :  { %v2131_v34 = vsel %vm2010_vm13, %v2130_v41, %v2129_v37 }
 0x1b7   :  { %v2134_v47 = vsel %vm3310_vm14, %v3132_v56, %v2131_v34 }
 0x1b8   :  { %v2136_v55 = vmul.f32 %v2134_v47, %v2134_v47 }
 0x1ba   :  { %v2137_v44 = vmul.f32 -0.001358992, %v2136_v55  ;;  %v2144_v7 = vmul.f32 -0.00019511016, %v2136_v55 }
 0x1bc   :  { %v2138_v59 = vadd.f32 0.041655596, %v2137_v44  ;;  %v2145_v26 = vadd.f32 0.008332121, %v2144_v7 }
 0x1be   :  { %v2139_v51 = vmul.f32 %v2138_v59, %v2136_v55  ;;  %v2146_v3 = vmul.f32 %v2145_v26, %v2136_v55 }
 0x1c0   :  { %v2140_v1 = vadd.f32 -0.4999988, %v2139_v51  ;;  %v2147_v46 = vadd.f32 -0.16666654, %v2146_v3 }
 0x1c2   :  { %v2141_v4 = vmul.f32 %v2140_v1, %v2136_v55  ;;  %v2148_v33 = vmul.f32 %v2147_v46, %v2136_v55 }
 0x1c4   :  { %v2142_v62 = vadd.f32 1.0, %v2141_v4  ;;  %v2149_v32 = vadd.f32 1.0, %v2148_v33 }
 0x1c6   :  { %v2150_v10 = vmul.f32 %v2149_v32, %v2134_v47  ;;  %v2158_v35 = vxor.u32 2147483648, %v2142_v62 }
 0x1c8   :  { %v2155_v54 = vxor.u32 2147483648, %v2150_v10  ;;  %v2159_v28 = vsel %vm2157_vm15, %v2158_v35, %v2150_v10 }
 0x1ca   :  { %v2156_v60 = vsel %vm2154_vm9, %v2142_v62, %v2155_v54 }
 0x1cb   :  { %v2160_v23 = vsel %vm2153_vm0, %v2156_v60, %v2159_v28 }
 0x1cc   :  { %v2161_v20 = vsel %vm2151_vm1, nan, %v2160_v23 }
 0x1cd   :  { %v2192_v63 = vsel %vm2189_vm6, %v2161_v20, %v2350_v48 }
 0x1ce   :  { %2198 = vst [vmem:[#allocation2 + $0x28] sm:$0xff] %v2192_v63 }
 0x1cf   :  { %2214 = dma.vmem_to_hbm [thread:$0]  %s2207_s26, 1152, %s2209_s29, [#allocation3], %s2385_s30, %s2385_s30, %s2386_s3  }
 0x1d0   :  { %2375 = dma.done.wait [#allocation3], 1152  }
 0x1d1   :  { %2376 = vsyncadd [#allocation3], 4294966144 }
 0x1d2   :  { %2219 = vsyncpa [#allocation3], 1 }

</bundles_post_ra>
